<compile_context>
chip_gen: v6e
topology: v6e:2x2x1
jax: 0.10.0
libtpu: 0.0.40
codegen_flags: <defaults>
</compile_context>

<pallas_src>
import functools

import jax
import jax.numpy as jnp
from jax.experimental import pallas as pl
from jax.experimental.pallas import tpu as pltpu

EPS = 1e-5


def _softplus(x):
    # Matches torch.nn.Softplus(beta=1, threshold=20)
    return jnp.where(x > 20.0, x, jnp.log(1.0 + jnp.exp(jnp.minimum(x, 20.0))))


def _bn_train(x, gamma, beta):
    # Training-mode BatchNorm1d: per-feature batch stats, biased variance,
    # centered accumulation (numerically safe).
    mean = jnp.mean(x, axis=0, keepdims=True)
    var = jnp.mean((x - mean) ** 2, axis=0, keepdims=True)
    return (x - mean) * jax.lax.rsqrt(var + EPS) * gamma + beta


def conv_layer_kernel(
    idx_ref, atom_ref, bond_ref,
    wsf_ref, wnf_ref, wbf_ref, bf_ref,      # filter-half weights / bias
    wsc_ref, wnc_ref, wbc_ref, bc_ref,      # core-half weights / bias
    g1f_ref, be1f_ref, g1c_ref, be1c_ref,   # BN1 params (filter / core halves)
    g2_ref, be2_ref,                        # BN2 params
    out_ref,
    *, n_atoms, max_nbr, atom_fea_len):
    N, M, A = n_atoms, max_nbr, atom_fea_len
    NM = N * M

    atom = atom_ref[...]                                    # (N, A)
    bond = bond_ref[...]                                    # (NM, B)

    # One-hot gather / broadcast matrices, built once from iota + the
    # neighbor-index column.  Row r = n*M + m:
    #   h_self[r, j] = 1 iff j == n        (self-feature broadcast)
    #   h_nbr [r, j] = 1 iff j == idx[n,m] (neighbor gather; OOB idx -> all 0)
    col = jax.lax.broadcasted_iota(jnp.int32, (NM, N), 1)
    row = jax.lax.broadcasted_iota(jnp.int32, (NM, N), 0)
    h_self = jnp.logical_and(col * M <= row, row < (col + 1) * M).astype(jnp.float32)
    h_nbr = (col == idx_ref[...]).astype(jnp.float32)

    def gated_half(w_self, w_nbr, w_bond, bias):
        # [self | nbr_atom | bond] @ W + b without materializing the concat:
        # project the N atoms once, then let the one-hot MXU matmuls do the
        # per-(atom, slot) broadcast / gather.
        self_proj = jnp.dot(atom, w_self, preferred_element_type=jnp.float32) + bias
        nbr_proj = jnp.dot(atom, w_nbr, preferred_element_type=jnp.float32)
        return (jnp.dot(h_self, self_proj, preferred_element_type=jnp.float32)
                + jnp.dot(h_nbr, nbr_proj, preferred_element_type=jnp.float32)
                + jnp.dot(bond, w_bond, preferred_element_type=jnp.float32))

    gated_f = gated_half(wsf_ref[...], wnf_ref[...], wbf_ref[...], bf_ref[...])
    gated_c = gated_half(wsc_ref[...], wnc_ref[...], wbc_ref[...], bc_ref[...])

    nbr_filter = jax.nn.sigmoid(_bn_train(gated_f, g1f_ref[...], be1f_ref[...]))
    nbr_core = _softplus(_bn_train(gated_c, g1c_ref[...], be1c_ref[...]))
    prod = nbr_filter * nbr_core                             # (NM, A)

    # Neighbor sum as a one-hot summing matmul (MXU) -> (N, A).
    srow = jax.lax.broadcasted_iota(jnp.int32, (N, NM), 0)
    scol = jax.lax.broadcasted_iota(jnp.int32, (N, NM), 1)
    h_sum = jnp.logical_and(scol >= srow * M, scol < (srow + 1) * M).astype(jnp.float32)
    nbr_sum = jnp.dot(h_sum, prod, preferred_element_type=jnp.float32)

    out_ref[...] = _softplus(atom + _bn_train(nbr_sum, g2_ref[...], be2_ref[...]))


def conv_layer_pallas(atom_in_fea, nbr_fea, nbr_fea_idx, params):
    """atom_in_fea (N, A) f32, nbr_fea (N, M, B) f32, nbr_fea_idx (N, M) i32."""
    N, A = atom_in_fea.shape
    _, M, B = nbr_fea.shape
    NM = N * M

    # Row-major flatten only (no transpose => no extra HBM pass).
    bond2d = nbr_fea.reshape(NM, B)
    idx_col = nbr_fea_idx.astype(jnp.int32).reshape(NM, 1)

    # Split fc_full weight by input rows (self | nbr_atom | bond) and by
    # output columns (filter | core) so the kernel never slices lanes.
    w_t = params["w"].T                                     # (2A + B, 2A)
    w_self, w_nbr, w_bond = w_t[:A], w_t[A:2 * A], w_t[2 * A:]
    wsf, wsc = w_self[:, :A], w_self[:, A:]
    wnf, wnc = w_nbr[:, :A], w_nbr[:, A:]
    wbf, wbc = w_bond[:, :A], w_bond[:, A:]
    bf, bc = params["b"][None, :A], params["b"][None, A:]
    g1f, g1c = params["bn1_gamma"][None, :A], params["bn1_gamma"][None, A:]
    be1f, be1c = params["bn1_beta"][None, :A], params["bn1_beta"][None, A:]
    g2, be2 = params["bn2_gamma"][None, :], params["bn2_beta"][None, :]

    kernel = functools.partial(conv_layer_kernel,
                               n_atoms=N, max_nbr=M, atom_fea_len=A)

    def const(shape):
        return pl.BlockSpec(shape, lambda i: (0,) * len(shape))

    grid_spec = pltpu.PrefetchScalarGridSpec(
        num_scalar_prefetch=0,
        grid=(1,),                                          # fully resident, single pass
        in_specs=[
            const((NM, 1)),                                 # neighbor indices
            const((N, A)),                                  # atom features
            const((NM, B)),                                 # bond features (one big matmul)
            const((A, A)), const((A, A)), const((B, A)), const((1, A)),   # filter half
            const((A, A)), const((A, A)), const((B, A)), const((1, A)),   # core half
            const((1, A)), const((1, A)), const((1, A)), const((1, A)),   # bn1 f/c
            const((1, A)), const((1, A)),                                  # bn2
        ],
        out_specs=pl.BlockSpec((N, A), lambda i: (0, 0)),
    )

    flops = (4 * 2 * N * A * A              # atom projections (both halves)
             + 2 * 2 * NM * B * A           # bond matmuls
             + 4 * 2 * NM * N * A           # one-hot gather/broadcast matmuls
             + 2 * N * NM * A               # neighbor-sum matmul
             + 12 * NM * A)                 # elementwise (approx)
    transcendentals = 3 * NM * A + 2 * N * A
    bytes_accessed = 4 * (2 * N * A + NM * B + NM + (2 * A + B) * 2 * A + 8 * A)

    return pl.pallas_call(
        kernel,
        out_shape=jax.ShapeDtypeStruct((N, A), jnp.float32),
        grid_spec=grid_spec,
        compiler_params=pltpu.CompilerParams(
            dimension_semantics=("arbitrary",),
            vmem_limit_bytes=32 * 1024 * 1024,
        ),
        cost_estimate=pl.CostEstimate(
            flops=flops, transcendentals=transcendentals,
            bytes_accessed=bytes_accessed),
    )(idx_col, atom_in_fea, bond2d,
      wsf, wnf, wbf, bf, wsc, wnc, wbc, bc,
      g1f, be1f, g1c, be1c, g2, be2)


def conv_layer_ref(atom_in_fea, nbr_fea, nbr_fea_idx, params):
    """Pure-JAX reference mirroring the PyTorch forward (training-mode BN)."""
    N, A = atom_in_fea.shape
    _, M, B = nbr_fea.shape
    atom_nbr = atom_in_fea[nbr_fea_idx]
    self_exp = jnp.broadcast_to(atom_in_fea[:, None, :], (N, M, A))
    total = jnp.concatenate([self_exp, atom_nbr, nbr_fea], axis=2)
    g = total @ params["w"].T + params["b"]
    g2d = g.reshape(-1, 2 * A)
    m1 = g2d.mean(0); v1 = ((g2d - m1) ** 2).mean(0)
    g2d = (g2d - m1) / jnp.sqrt(v1 + EPS) * params["bn1_gamma"] + params["bn1_beta"]
    g = g2d.reshape(N, M, 2 * A)
    filt = jax.nn.sigmoid(g[..., :A])
    core = _softplus(g[..., A:])
    s = jnp.sum(filt * core, axis=1)
    m2 = s.mean(0); v2 = ((s - m2) ** 2).mean(0)
    s = (s - m2) / jnp.sqrt(v2 + EPS) * params["bn2_gamma"] + params["bn2_beta"]
    return _softplus(atom_in_fea + s)


def init_params(key, atom_fea_len, nbr_fea_len):
    in_dim = 2 * atom_fea_len + nbr_fea_len
    out_dim = 2 * atom_fea_len
    kw, kb = jax.random.split(key)
    bound = 1.0 / jnp.sqrt(in_dim)
    return {
        # PyTorch nn.Linear stores weight as (out, in)
        "w": jax.random.uniform(kw, (out_dim, in_dim), jnp.float32, -bound, bound),
        "b": jax.random.uniform(kb, (out_dim,), jnp.float32, -bound, bound),
        "bn1_gamma": jnp.ones((out_dim,), jnp.float32),
        "bn1_beta": jnp.zeros((out_dim,), jnp.float32),
        "bn2_gamma": jnp.ones((atom_fea_len,), jnp.float32),
        "bn2_beta": jnp.zeros((atom_fea_len,), jnp.float32),
    }


if __name__ == "__main__":
    N, M = 16, 8                 # atoms, max neighbors
    atom_fea_len, nbr_fea_len = 32, 16

    key = jax.random.PRNGKey(0)
    k1, k2, k3, kp = jax.random.split(key, 4)

    atom_in_fea = jax.random.normal(k1, (N, atom_fea_len), jnp.float32)
    nbr_fea = jax.random.normal(k2, (N, M, nbr_fea_len), jnp.float32)
    nbr_fea_idx = jax.random.randint(k3, (N, M), 0, N, jnp.int32)
    params = init_params(kp, atom_fea_len, nbr_fea_len)

    out = conv_layer_pallas(atom_in_fea, nbr_fea, nbr_fea_idx, params)
    out = jax.block_until_ready(out)

    ref = conv_layer_ref(atom_in_fea, nbr_fea, nbr_fea_idx, params)
    assert out.shape == (N, atom_fea_len)
    err = float(jnp.max(jnp.abs(out - ref)))
    assert jnp.allclose(out, ref, atol=2e-3, rtol=2e-3), f"mismatch vs reference (max abs err {err})"

    print("KERNEL_OK")
</pallas_src>

<mosaic_0001>
module attributes {stable_mosaic.version = 11 : i64} {
  func.func @conv_layer_kernel(%arg0: i32, %arg1: memref<128x1xi32, #tpu.memory_space<vmem>>, %arg2: memref<16x32xf32, #tpu.memory_space<vmem>>, %arg3: memref<128x16xf32, #tpu.memory_space<vmem>>, %arg4: memref<32x32xf32, #tpu.memory_space<vmem>>, %arg5: memref<32x32xf32, #tpu.memory_space<vmem>>, %arg6: memref<16x32xf32, #tpu.memory_space<vmem>>, %arg7: memref<1x32xf32, #tpu.memory_space<vmem>>, %arg8: memref<32x32xf32, #tpu.memory_space<vmem>>, %arg9: memref<32x32xf32, #tpu.memory_space<vmem>>, %arg10: memref<16x32xf32, #tpu.memory_space<vmem>>, %arg11: memref<1x32xf32, #tpu.memory_space<vmem>>, %arg12: memref<1x32xf32, #tpu.memory_space<vmem>>, %arg13: memref<1x32xf32, #tpu.memory_space<vmem>>, %arg14: memref<1x32xf32, #tpu.memory_space<vmem>>, %arg15: memref<1x32xf32, #tpu.memory_space<vmem>>, %arg16: memref<1x32xf32, #tpu.memory_space<vmem>>, %arg17: memref<1x32xf32, #tpu.memory_space<vmem>>, %arg18: memref<16x32xf32, #tpu.memory_space<vmem>>) attributes {dimension_semantics = [#tpu.dimension_semantics<arbitrary>], iteration_bounds = array<i64: 1>, scalar_prefetch = 0 : i64, scratch_operands = 0 : i64, tpu.core_type = #tpu.core_type<tc>, window_params = [{pipeline_mode = #tpu.pipeline_mode<synchronous>, transform_indices = @transform_0, window_bounds = array<i64: 128, 1>}, {pipeline_mode = #tpu.pipeline_mode<synchronous>, transform_indices = @transform_1, window_bounds = array<i64: 16, 32>}, {pipeline_mode = #tpu.pipeline_mode<synchronous>, transform_indices = @transform_2, window_bounds = array<i64: 128, 16>}, {pipeline_mode = #tpu.pipeline_mode<synchronous>, transform_indices = @transform_3, window_bounds = array<i64: 32, 32>}, {pipeline_mode = #tpu.pipeline_mode<synchronous>, transform_indices = @transform_4, window_bounds = array<i64: 32, 32>}, {pipeline_mode = #tpu.pipeline_mode<synchronous>, transform_indices = @transform_5, window_bounds = array<i64: 16, 32>}, {pipeline_mode = #tpu.pipeline_mode<synchronous>, transform_indices = @transform_6, window_bounds = array<i64: 1, 32>}, {pipeline_mode = #tpu.pipeline_mode<synchronous>, transform_indices = @transform_7, window_bounds = array<i64: 32, 32>}, {pipeline_mode = #tpu.pipeline_mode<synchronous>, transform_indices = @transform_8, window_bounds = array<i64: 32, 32>}, {pipeline_mode = #tpu.pipeline_mode<synchronous>, transform_indices = @transform_9, window_bounds = array<i64: 16, 32>}, {pipeline_mode = #tpu.pipeline_mode<synchronous>, transform_indices = @transform_10, window_bounds = array<i64: 1, 32>}, {pipeline_mode = #tpu.pipeline_mode<synchronous>, transform_indices = @transform_11, window_bounds = array<i64: 1, 32>}, {pipeline_mode = #tpu.pipeline_mode<synchronous>, transform_indices = @transform_12, window_bounds = array<i64: 1, 32>}, {pipeline_mode = #tpu.pipeline_mode<synchronous>, transform_indices = @transform_13, window_bounds = array<i64: 1, 32>}, {pipeline_mode = #tpu.pipeline_mode<synchronous>, transform_indices = @transform_14, window_bounds = array<i64: 1, 32>}, {pipeline_mode = #tpu.pipeline_mode<synchronous>, transform_indices = @transform_15, window_bounds = array<i64: 1, 32>}, {pipeline_mode = #tpu.pipeline_mode<synchronous>, transform_indices = @transform_16, window_bounds = array<i64: 1, 32>}, {pipeline_mode = #tpu.pipeline_mode<synchronous>, transform_indices = @transform_17, window_bounds = array<i64: 16, 32>}]} {
    %c0 = arith.constant 0 : index
    %c0_0 = arith.constant 0 : index
    %0 = vector.load %arg2[%c0, %c0_0] : memref<16x32xf32, #tpu.memory_space<vmem>>, vector<16x32xf32>
    %c0_1 = arith.constant 0 : index
    %c0_2 = arith.constant 0 : index
    %1 = vector.load %arg3[%c0_1, %c0_2] : memref<128x16xf32, #tpu.memory_space<vmem>>, vector<128x16xf32>
    %2 = tpu.iota {dimensions = array<i32: 1>} : vector<128x16xi32>
    %3 = tpu.iota {dimensions = array<i32: 0>} : vector<128x16xi32>
    %c8_i32 = arith.constant 8 : i32
    %4 = vector.broadcast %c8_i32 : i32 to vector<128x16xi32>
    %5 = arith.muli %2, %4 : vector<128x16xi32>
    %6 = arith.cmpi sle, %5, %3 : vector<128x16xi32>
    %c1_i32 = arith.constant 1 : i32
    %7 = vector.broadcast %c1_i32 : i32 to vector<128x16xi32>
    %8 = arith.addi %2, %7 : vector<128x16xi32>
    %c8_i32_3 = arith.constant 8 : i32
    %9 = vector.broadcast %c8_i32_3 : i32 to vector<128x16xi32>
    %10 = arith.muli %8, %9 : vector<128x16xi32>
    %11 = arith.cmpi slt, %3, %10 : vector<128x16xi32>
    %12 = arith.andi %6, %11 : vector<128x16xi1>
    %13 = arith.extui %12 : vector<128x16xi1> to vector<128x16xi32>
    %14 = arith.sitofp %13 : vector<128x16xi32> to vector<128x16xf32>
    %c0_4 = arith.constant 0 : index
    %c0_5 = arith.constant 0 : index
    %15 = vector.load %arg1[%c0_4, %c0_5] : memref<128x1xi32, #tpu.memory_space<vmem>>, vector<128x1xi32>
    %16 = vector.broadcast %15 : vector<128x1xi32> to vector<128x16xi32>
    %17 = arith.cmpi eq, %2, %16 : vector<128x16xi32>
    %18 = arith.extui %17 : vector<128x16xi1> to vector<128x16xi32>
    %19 = arith.sitofp %18 : vector<128x16xi32> to vector<128x16xf32>
    %c0_6 = arith.constant 0 : index
    %c0_7 = arith.constant 0 : index
    %20 = vector.load %arg4[%c0_6, %c0_7] : memref<32x32xf32, #tpu.memory_space<vmem>>, vector<32x32xf32>
    %c0_8 = arith.constant 0 : index
    %c0_9 = arith.constant 0 : index
    %21 = vector.load %arg5[%c0_8, %c0_9] : memref<32x32xf32, #tpu.memory_space<vmem>>, vector<32x32xf32>
    %c0_10 = arith.constant 0 : index
    %c0_11 = arith.constant 0 : index
    %22 = vector.load %arg6[%c0_10, %c0_11] : memref<16x32xf32, #tpu.memory_space<vmem>>, vector<16x32xf32>
    %c0_12 = arith.constant 0 : index
    %c0_13 = arith.constant 0 : index
    %23 = vector.load %arg7[%c0_12, %c0_13] : memref<1x32xf32, #tpu.memory_space<vmem>>, vector<1x32xf32>
    %cst = arith.constant dense<0.000000e+00> : vector<16x32xf32>
    %24 = tpu.matmul %0, %20, %cst {dimension_numbers = #tpu.dot_dimension_numbers<[1], [0], [0], [1], [0, 0, 1, 1], [], []>} : vector<16x32xf32>, vector<32x32xf32>, vector<16x32xf32> -> vector<16x32xf32>
    %25 = vector.broadcast %23 : vector<1x32xf32> to vector<16x32xf32>
    %26 = arith.addf %24, %25 : vector<16x32xf32>
    %cst_14 = arith.constant dense<0.000000e+00> : vector<16x32xf32>
    %27 = tpu.matmul %0, %21, %cst_14 {dimension_numbers = #tpu.dot_dimension_numbers<[1], [0], [0], [1], [0, 0, 1, 1], [], []>} : vector<16x32xf32>, vector<32x32xf32>, vector<16x32xf32> -> vector<16x32xf32>
    %cst_15 = arith.constant dense<0.000000e+00> : vector<128x32xf32>
    %28 = tpu.matmul %14, %26, %cst_15 {dimension_numbers = #tpu.dot_dimension_numbers<[1], [0], [0], [1], [0, 0, 1, 1], [], []>} : vector<128x16xf32>, vector<16x32xf32>, vector<128x32xf32> -> vector<128x32xf32>
    %cst_16 = arith.constant dense<0.000000e+00> : vector<128x32xf32>
    %29 = tpu.matmul %19, %27, %cst_16 {dimension_numbers = #tpu.dot_dimension_numbers<[1], [0], [0], [1], [0, 0, 1, 1], [], []>} : vector<128x16xf32>, vector<16x32xf32>, vector<128x32xf32> -> vector<128x32xf32>
    %30 = arith.addf %28, %29 : vector<128x32xf32>
    %cst_17 = arith.constant dense<0.000000e+00> : vector<128x32xf32>
    %31 = tpu.matmul %1, %22, %cst_17 {dimension_numbers = #tpu.dot_dimension_numbers<[1], [0], [0], [1], [0, 0, 1, 1], [], []>} : vector<128x16xf32>, vector<16x32xf32>, vector<128x32xf32> -> vector<128x32xf32>
    %32 = arith.addf %30, %31 : vector<128x32xf32>
    %c0_18 = arith.constant 0 : index
    %c0_19 = arith.constant 0 : index
    %33 = vector.load %arg8[%c0_18, %c0_19] : memref<32x32xf32, #tpu.memory_space<vmem>>, vector<32x32xf32>
    %c0_20 = arith.constant 0 : index
    %c0_21 = arith.constant 0 : index
    %34 = vector.load %arg9[%c0_20, %c0_21] : memref<32x32xf32, #tpu.memory_space<vmem>>, vector<32x32xf32>
    %c0_22 = arith.constant 0 : index
    %c0_23 = arith.constant 0 : index
    %35 = vector.load %arg10[%c0_22, %c0_23] : memref<16x32xf32, #tpu.memory_space<vmem>>, vector<16x32xf32>
    %c0_24 = arith.constant 0 : index
    %c0_25 = arith.constant 0 : index
    %36 = vector.load %arg11[%c0_24, %c0_25] : memref<1x32xf32, #tpu.memory_space<vmem>>, vector<1x32xf32>
    %cst_26 = arith.constant dense<0.000000e+00> : vector<16x32xf32>
    %37 = tpu.matmul %0, %33, %cst_26 {dimension_numbers = #tpu.dot_dimension_numbers<[1], [0], [0], [1], [0, 0, 1, 1], [], []>} : vector<16x32xf32>, vector<32x32xf32>, vector<16x32xf32> -> vector<16x32xf32>
    %38 = vector.broadcast %36 : vector<1x32xf32> to vector<16x32xf32>
    %39 = arith.addf %37, %38 : vector<16x32xf32>
    %cst_27 = arith.constant dense<0.000000e+00> : vector<16x32xf32>
    %40 = tpu.matmul %0, %34, %cst_27 {dimension_numbers = #tpu.dot_dimension_numbers<[1], [0], [0], [1], [0, 0, 1, 1], [], []>} : vector<16x32xf32>, vector<32x32xf32>, vector<16x32xf32> -> vector<16x32xf32>
    %cst_28 = arith.constant dense<0.000000e+00> : vector<128x32xf32>
    %41 = tpu.matmul %14, %39, %cst_28 {dimension_numbers = #tpu.dot_dimension_numbers<[1], [0], [0], [1], [0, 0, 1, 1], [], []>} : vector<128x16xf32>, vector<16x32xf32>, vector<128x32xf32> -> vector<128x32xf32>
    %cst_29 = arith.constant dense<0.000000e+00> : vector<128x32xf32>
    %42 = tpu.matmul %19, %40, %cst_29 {dimension_numbers = #tpu.dot_dimension_numbers<[1], [0], [0], [1], [0, 0, 1, 1], [], []>} : vector<128x16xf32>, vector<16x32xf32>, vector<128x32xf32> -> vector<128x32xf32>
    %43 = arith.addf %41, %42 : vector<128x32xf32>
    %cst_30 = arith.constant dense<0.000000e+00> : vector<128x32xf32>
    %44 = tpu.matmul %1, %35, %cst_30 {dimension_numbers = #tpu.dot_dimension_numbers<[1], [0], [0], [1], [0, 0, 1, 1], [], []>} : vector<128x16xf32>, vector<16x32xf32>, vector<128x32xf32> -> vector<128x32xf32>
    %45 = arith.addf %43, %44 : vector<128x32xf32>
    %c0_31 = arith.constant 0 : index
    %c0_32 = arith.constant 0 : index
    %46 = vector.load %arg12[%c0_31, %c0_32] : memref<1x32xf32, #tpu.memory_space<vmem>>, vector<1x32xf32>
    %c0_33 = arith.constant 0 : index
    %c0_34 = arith.constant 0 : index
    %47 = vector.load %arg13[%c0_33, %c0_34] : memref<1x32xf32, #tpu.memory_space<vmem>>, vector<1x32xf32>
    %cst_35 = arith.constant dense<0.000000e+00> : vector<32xf32>
    %48 = vector.multi_reduction <add>, %32, %cst_35 [0] : vector<128x32xf32> to vector<32xf32>
    %49 = vector.shape_cast %48 : vector<32xf32> to vector<1x32xf32>
    %cst_36 = arith.constant 1.280000e+02 : f32
    %50 = vector.broadcast %cst_36 : f32 to vector<1x32xf32>
    %51 = arith.divf %49, %50 : vector<1x32xf32>
    %52 = vector.broadcast %51 : vector<1x32xf32> to vector<128x32xf32>
    %53 = arith.subf %32, %52 : vector<128x32xf32>
    %54 = arith.mulf %53, %53 : vector<128x32xf32>
    %cst_37 = arith.constant dense<0.000000e+00> : vector<32xf32>
    %55 = vector.multi_reduction <add>, %54, %cst_37 [0] : vector<128x32xf32> to vector<32xf32>
    %56 = vector.shape_cast %55 : vector<32xf32> to vector<1x32xf32>
    %cst_38 = arith.constant 1.280000e+02 : f32
    %57 = vector.broadcast %cst_38 : f32 to vector<1x32xf32>
    %58 = arith.divf %56, %57 : vector<1x32xf32>
    %59 = vector.broadcast %51 : vector<1x32xf32> to vector<128x32xf32>
    %60 = arith.subf %32, %59 : vector<128x32xf32>
    %cst_39 = arith.constant 9.99999974E-6 : f32
    %61 = vector.broadcast %cst_39 : f32 to vector<1x32xf32>
    %62 = arith.addf %58, %61 : vector<1x32xf32>
    %63 = math.rsqrt %62 : vector<1x32xf32>
    %64 = vector.broadcast %63 : vector<1x32xf32> to vector<128x32xf32>
    %65 = arith.mulf %60, %64 : vector<128x32xf32>
    %66 = vector.broadcast %46 : vector<1x32xf32> to vector<128x32xf32>
    %67 = arith.mulf %65, %66 : vector<128x32xf32>
    %68 = vector.broadcast %47 : vector<1x32xf32> to vector<128x32xf32>
    %69 = arith.addf %67, %68 : vector<128x32xf32>
    %70 = arith.negf %69 : vector<128x32xf32>
    %71 = math.exp %70 : vector<128x32xf32>
    %cst_40 = arith.constant 1.000000e+00 : f32
    %72 = vector.broadcast %cst_40 : f32 to vector<128x32xf32>
    %73 = arith.addf %72, %71 : vector<128x32xf32>
    %74 = arith.divf %72, %73 : vector<128x32xf32>
    %c0_41 = arith.constant 0 : index
    %c0_42 = arith.constant 0 : index
    %75 = vector.load %arg14[%c0_41, %c0_42] : memref<1x32xf32, #tpu.memory_space<vmem>>, vector<1x32xf32>
    %c0_43 = arith.constant 0 : index
    %c0_44 = arith.constant 0 : index
    %76 = vector.load %arg15[%c0_43, %c0_44] : memref<1x32xf32, #tpu.memory_space<vmem>>, vector<1x32xf32>
    %cst_45 = arith.constant dense<0.000000e+00> : vector<32xf32>
    %77 = vector.multi_reduction <add>, %45, %cst_45 [0] : vector<128x32xf32> to vector<32xf32>
    %78 = vector.shape_cast %77 : vector<32xf32> to vector<1x32xf32>
    %cst_46 = arith.constant 1.280000e+02 : f32
    %79 = vector.broadcast %cst_46 : f32 to vector<1x32xf32>
    %80 = arith.divf %78, %79 : vector<1x32xf32>
    %81 = vector.broadcast %80 : vector<1x32xf32> to vector<128x32xf32>
    %82 = arith.subf %45, %81 : vector<128x32xf32>
    %83 = arith.mulf %82, %82 : vector<128x32xf32>
    %cst_47 = arith.constant dense<0.000000e+00> : vector<32xf32>
    %84 = vector.multi_reduction <add>, %83, %cst_47 [0] : vector<128x32xf32> to vector<32xf32>
    %85 = vector.shape_cast %84 : vector<32xf32> to vector<1x32xf32>
    %cst_48 = arith.constant 1.280000e+02 : f32
    %86 = vector.broadcast %cst_48 : f32 to vector<1x32xf32>
    %87 = arith.divf %85, %86 : vector<1x32xf32>
    %88 = vector.broadcast %80 : vector<1x32xf32> to vector<128x32xf32>
    %89 = arith.subf %45, %88 : vector<128x32xf32>
    %cst_49 = arith.constant 9.99999974E-6 : f32
    %90 = vector.broadcast %cst_49 : f32 to vector<1x32xf32>
    %91 = arith.addf %87, %90 : vector<1x32xf32>
    %92 = math.rsqrt %91 : vector<1x32xf32>
    %93 = vector.broadcast %92 : vector<1x32xf32> to vector<128x32xf32>
    %94 = arith.mulf %89, %93 : vector<128x32xf32>
    %95 = vector.broadcast %75 : vector<1x32xf32> to vector<128x32xf32>
    %96 = arith.mulf %94, %95 : vector<128x32xf32>
    %97 = vector.broadcast %76 : vector<1x32xf32> to vector<128x32xf32>
    %98 = arith.addf %96, %97 : vector<128x32xf32>
    %cst_50 = arith.constant 2.000000e+01 : f32
    %99 = vector.broadcast %cst_50 : f32 to vector<128x32xf32>
    %100 = arith.cmpf ogt, %98, %99 : vector<128x32xf32>
    %cst_51 = arith.constant 2.000000e+01 : f32
    %101 = vector.broadcast %cst_51 : f32 to vector<128x32xf32>
    %102 = arith.minimumf %98, %101 : vector<128x32xf32>
    %103 = math.exp %102 : vector<128x32xf32>
    %cst_52 = arith.constant 1.000000e+00 : f32
    %104 = vector.broadcast %cst_52 : f32 to vector<128x32xf32>
    %105 = arith.addf %104, %103 : vector<128x32xf32>
    %106 = math.log %105 : vector<128x32xf32>
    %107 = arith.select %100, %98, %106 : vector<128x32xi1>, vector<128x32xf32>
    %108 = arith.mulf %74, %107 : vector<128x32xf32>
    %109 = tpu.iota {dimensions = array<i32: 0>} : vector<16x128xi32>
    %110 = tpu.iota {dimensions = array<i32: 1>} : vector<16x128xi32>
    %c8_i32_53 = arith.constant 8 : i32
    %111 = vector.broadcast %c8_i32_53 : i32 to vector<16x128xi32>
    %112 = arith.muli %109, %111 : vector<16x128xi32>
    %113 = arith.cmpi sge, %110, %112 : vector<16x128xi32>
    %c1_i32_54 = arith.constant 1 : i32
    %114 = vector.broadcast %c1_i32_54 : i32 to vector<16x128xi32>
    %115 = arith.addi %109, %114 : vector<16x128xi32>
    %c8_i32_55 = arith.constant 8 : i32
    %116 = vector.broadcast %c8_i32_55 : i32 to vector<16x128xi32>
    %117 = arith.muli %115, %116 : vector<16x128xi32>
    %118 = arith.cmpi slt, %110, %117 : vector<16x128xi32>
    %119 = arith.andi %113, %118 : vector<16x128xi1>
    %120 = arith.extui %119 : vector<16x128xi1> to vector<16x128xi32>
    %121 = arith.sitofp %120 : vector<16x128xi32> to vector<16x128xf32>
    %cst_56 = arith.constant dense<0.000000e+00> : vector<16x32xf32>
    %122 = tpu.matmul %121, %108, %cst_56 {dimension_numbers = #tpu.dot_dimension_numbers<[1], [0], [0], [1], [0, 0, 1, 1], [], []>} : vector<16x128xf32>, vector<128x32xf32>, vector<16x32xf32> -> vector<16x32xf32>
    %c0_57 = arith.constant 0 : index
    %c0_58 = arith.constant 0 : index
    %123 = vector.load %arg16[%c0_57, %c0_58] : memref<1x32xf32, #tpu.memory_space<vmem>>, vector<1x32xf32>
    %c0_59 = arith.constant 0 : index
    %c0_60 = arith.constant 0 : index
    %124 = vector.load %arg17[%c0_59, %c0_60] : memref<1x32xf32, #tpu.memory_space<vmem>>, vector<1x32xf32>
    %cst_61 = arith.constant dense<0.000000e+00> : vector<32xf32>
    %125 = vector.multi_reduction <add>, %122, %cst_61 [0] : vector<16x32xf32> to vector<32xf32>
    %126 = vector.shape_cast %125 : vector<32xf32> to vector<1x32xf32>
    %cst_62 = arith.constant 1.600000e+01 : f32
    %127 = vector.broadcast %cst_62 : f32 to vector<1x32xf32>
    %128 = arith.divf %126, %127 : vector<1x32xf32>
    %129 = vector.broadcast %128 : vector<1x32xf32> to vector<16x32xf32>
    %130 = arith.subf %122, %129 : vector<16x32xf32>
    %131 = arith.mulf %130, %130 : vector<16x32xf32>
    %cst_63 = arith.constant dense<0.000000e+00> : vector<32xf32>
    %132 = vector.multi_reduction <add>, %131, %cst_63 [0] : vector<16x32xf32> to vector<32xf32>
    %133 = vector.shape_cast %132 : vector<32xf32> to vector<1x32xf32>
    %cst_64 = arith.constant 1.600000e+01 : f32
    %134 = vector.broadcast %cst_64 : f32 to vector<1x32xf32>
    %135 = arith.divf %133, %134 : vector<1x32xf32>
    %136 = vector.broadcast %128 : vector<1x32xf32> to vector<16x32xf32>
    %137 = arith.subf %122, %136 : vector<16x32xf32>
    %cst_65 = arith.constant 9.99999974E-6 : f32
    %138 = vector.broadcast %cst_65 : f32 to vector<1x32xf32>
    %139 = arith.addf %135, %138 : vector<1x32xf32>
    %140 = math.rsqrt %139 : vector<1x32xf32>
    %141 = vector.broadcast %140 : vector<1x32xf32> to vector<16x32xf32>
    %142 = arith.mulf %137, %141 : vector<16x32xf32>
    %143 = vector.broadcast %123 : vector<1x32xf32> to vector<16x32xf32>
    %144 = arith.mulf %142, %143 : vector<16x32xf32>
    %145 = vector.broadcast %124 : vector<1x32xf32> to vector<16x32xf32>
    %146 = arith.addf %144, %145 : vector<16x32xf32>
    %147 = arith.addf %0, %146 : vector<16x32xf32>
    %cst_66 = arith.constant 2.000000e+01 : f32
    %148 = vector.broadcast %cst_66 : f32 to vector<16x32xf32>
    %149 = arith.cmpf ogt, %147, %148 : vector<16x32xf32>
    %cst_67 = arith.constant 2.000000e+01 : f32
    %150 = vector.broadcast %cst_67 : f32 to vector<16x32xf32>
    %151 = arith.minimumf %147, %150 : vector<16x32xf32>
    %152 = math.exp %151 : vector<16x32xf32>
    %cst_68 = arith.constant 1.000000e+00 : f32
    %153 = vector.broadcast %cst_68 : f32 to vector<16x32xf32>
    %154 = arith.addf %153, %152 : vector<16x32xf32>
    %155 = math.log %154 : vector<16x32xf32>
    %156 = arith.select %149, %147, %155 : vector<16x32xi1>, vector<16x32xf32>
    %c0_69 = arith.constant 0 : index
    %c0_70 = arith.constant 0 : index
    %157 = vector.load %arg18[%c0_69, %c0_70] : memref<16x32xf32, #tpu.memory_space<vmem>>, vector<16x32xf32>
    tpu.vector_store %arg18[%c0_69, %c0_70], %156 {strides = array<i32>} : memref<16x32xf32, #tpu.memory_space<vmem>>, vector<16x32xf32>,
    return
  }
  func.func @transform_0(%arg0: i32) -> (i32, i32) {
    %c0_i32 = arith.constant 0 : i32
    %c0_i32_0 = arith.constant 0 : i32
    %c0_i32_1 = arith.constant 0 : i32
    return %c0_i32, %c0_i32_0 : i32, i32
  }
  func.func @transform_1(%arg0: i32) -> (i32, i32) {
    %c0_i32 = arith.constant 0 : i32
    %c0_i32_0 = arith.constant 0 : i32
    %c0_i32_1 = arith.constant 0 : i32
    return %c0_i32, %c0_i32_0 : i32, i32
  }
  func.func @transform_2(%arg0: i32) -> (i32, i32) {
    %c0_i32 = arith.constant 0 : i32
    %c0_i32_0 = arith.constant 0 : i32
    %c0_i32_1 = arith.constant 0 : i32
    return %c0_i32, %c0_i32_0 : i32, i32
  }
  func.func @transform_3(%arg0: i32) -> (i32, i32) {
    %c0_i32 = arith.constant 0 : i32
    %c0_i32_0 = arith.constant 0 : i32
    %c0_i32_1 = arith.constant 0 : i32
    return %c0_i32, %c0_i32_0 : i32, i32
  }
  func.func @transform_4(%arg0: i32) -> (i32, i32) {
    %c0_i32 = arith.constant 0 : i32
    %c0_i32_0 = arith.constant 0 : i32
    %c0_i32_1 = arith.constant 0 : i32
    return %c0_i32, %c0_i32_0 : i32, i32
  }
  func.func @transform_5(%arg0: i32) -> (i32, i32) {
    %c0_i32 = arith.constant 0 : i32
    %c0_i32_0 = arith.constant 0 : i32
    %c0_i32_1 = arith.constant 0 : i32
    return %c0_i32, %c0_i32_0 : i32, i32
  }
  func.func @transform_6(%arg0: i32) -> (i32, i32) {
    %c0_i32 = arith.constant 0 : i32
    %c0_i32_0 = arith.constant 0 : i32
    %c0_i32_1 = arith.constant 0 : i32
    return %c0_i32, %c0_i32_0 : i32, i32
  }
  func.func @transform_7(%arg0: i32) -> (i32, i32) {
    %c0_i32 = arith.constant 0 : i32
    %c0_i32_0 = arith.constant 0 : i32
    %c0_i32_1 = arith.constant 0 : i32
    return %c0_i32, %c0_i32_0 : i32, i32
  }
  func.func @transform_8(%arg0: i32) -> (i32, i32) {
    %c0_i32 = arith.constant 0 : i32
    %c0_i32_0 = arith.constant 0 : i32
    %c0_i32_1 = arith.constant 0 : i32
    return %c0_i32, %c0_i32_0 : i32, i32
  }
  func.func @transform_9(%arg0: i32) -> (i32, i32) {
    %c0_i32 = arith.constant 0 : i32
    %c0_i32_0 = arith.constant 0 : i32
    %c0_i32_1 = arith.constant 0 : i32
    return %c0_i32, %c0_i32_0 : i32, i32
  }
  func.func @transform_10(%arg0: i32) -> (i32, i32) {
    %c0_i32 = arith.constant 0 : i32
    %c0_i32_0 = arith.constant 0 : i32
    %c0_i32_1 = arith.constant 0 : i32
    return %c0_i32, %c0_i32_0 : i32, i32
  }
  func.func @transform_11(%arg0: i32) -> (i32, i32) {
    %c0_i32 = arith.constant 0 : i32
    %c0_i32_0 = arith.constant 0 : i32
    %c0_i32_1 = arith.constant 0 : i32
    return %c0_i32, %c0_i32_0 : i32, i32
  }
  func.func @transform_12(%arg0: i32) -> (i32, i32) {
    %c0_i32 = arith.constant 0 : i32
    %c0_i32_0 = arith.constant 0 : i32
    %c0_i32_1 = arith.constant 0 : i32
    return %c0_i32, %c0_i32_0 : i32, i32
  }
  func.func @transform_13(%arg0: i32) -> (i32, i32) {
    %c0_i32 = arith.constant 0 : i32
    %c0_i32_0 = arith.constant 0 : i32
    %c0_i32_1 = arith.constant 0 : i32
    return %c0_i32, %c0_i32_0 : i32, i32
  }
  func.func @transform_14(%arg0: i32) -> (i32, i32) {
    %c0_i32 = arith.constant 0 : i32
    %c0_i32_0 = arith.constant 0 : i32
    %c0_i32_1 = arith.constant 0 : i32
    return %c0_i32, %c0_i32_0 : i32, i32
  }
  func.func @transform_15(%arg0: i32) -> (i32, i32) {
    %c0_i32 = arith.constant 0 : i32
    %c0_i32_0 = arith.constant 0 : i32
    %c0_i32_1 = arith.constant 0 : i32
    return %c0_i32, %c0_i32_0 : i32, i32
  }
  func.func @transform_16(%arg0: i32) -> (i32, i32) {
    %c0_i32 = arith.constant 0 : i32
    %c0_i32_0 = arith.constant 0 : i32
    %c0_i32_1 = arith.constant 0 : i32
    return %c0_i32, %c0_i32_0 : i32, i32
  }
  func.func @transform_17(%arg0: i32) -> (i32, i32) {
    %c0_i32 = arith.constant 0 : i32
    %c0_i32_0 = arith.constant 0 : i32
    %c0_i32_1 = arith.constant 0 : i32
    return %c0_i32, %c0_i32_0 : i32, i32
  }
}

</mosaic_0001>

<bundles_post_ra>
// kernel: tpu_custom_call.1
= control target key start
LH: loop header
LB: loop body
LE: loop exit
PB: predicated region body
PF: predicated region fallthrough
CT: control target
= control target key end

     0   :  { %s4609_s0 = inlined_call_operand.vmem [shape: s32[128,1], index: 0, kind: input, shape index: {}]   ;;  %s4610_s1 = inlined_call_operand.vmem [shape: f32[16,32], index: 1, kind: input, shape index: {}]   ;;  %s4611_s2 = inlined_call_operand.vmem [shape: f32[128,16], index: 2, kind: input, shape index: {}]   ;;  %s4612_s3 = inlined_call_operand.vmem [shape: f32[32,32], index: 3, kind: input, shape index: {}]   ;;  %s4613_s4 = inlined_call_operand.vmem [shape: f32[32,32], index: 4, kind: input, shape index: {}]   ;;  %s4614_s5 = inlined_call_operand.vmem [shape: f32[16,32], index: 5, kind: input, shape index: {}]   ;;  %s4615_s6 = inlined_call_operand.vmem [shape: f32[1,32], index: 6, kind: input, shape index: {}]   ;;  %s4616_s7 = inlined_call_operand.vmem [shape: f32[32,32], index: 7, kind: input, shape index: {}]   ;;  %s4617_s8 = inlined_call_operand.vmem [shape: f32[32,32], index: 8, kind: input, shape index: {}]   ;;  %s4618_s9 = inlined_call_operand.vmem [shape: f32[16,32], index: 9, kind: input, shape index: {}]   ;;  %s4619_s10 = inlined_call_operand.vmem [shape: f32[1,32], index: 10, kind: input, shape index: {}]   ;;  %s4620_s11 = inlined_call_operand.vmem [shape: f32[1,32], index: 11, kind: input, shape index: {}]   ;;  %s4621_s12 = inlined_call_operand.vmem [shape: f32[1,32], index: 12, kind: input, shape index: {}]   ;;  %s4622_s13 = inlined_call_operand.vmem [shape: f32[1,32], index: 13, kind: input, shape index: {}]   ;;  %s4623_s14 = inlined_call_operand.vmem [shape: f32[1,32], index: 14, kind: input, shape index: {}]   ;;  %s4624_s15 = inlined_call_operand.vmem [shape: f32[1,32], index: 15, kind: input, shape index: {}]   ;;  %s4625_s16 = inlined_call_operand.vmem [shape: f32[1,32], index: 16, kind: input, shape index: {}]   ;;  %s4626_s17 = inlined_call_operand.hbm [shape: f32[16,32], index: 17, kind: output, shape index: {}]  }
   0x1   :  { %4649 = sst [smem:[#allocation20_spill]] %s4609_s0 }
   0x2   :  { %4650 = sst [smem:[#allocation21_spill]] %s4610_s1 }
   0x3   :  { %v292_v0 = vld [vmem:[%s4612_s3 + $0x18] sm:$0xff]  ;;  %v291_v2 = vld [vmem:[%s4612_s3 + $0x10] sm:$0xff]  ;;  %v290_v4 = vld [vmem:[%s4612_s3 + $0x8] sm:$0xff]  ;;  %s4651_s27 = sld [smem:[#allocation21_spill]]  ;;  %vm4629_vm0 = vcmask 261120  }
   0x4   :  { %v296_v1 = vld [vmem:[%s4613_s4 + $0x18] sm:$0xff]  ;;  %2750 = vmatprep.subr.mxu0 %v292_v0  ;;  %v295_v3 = vld [vmem:[%s4613_s4 + $0x10] sm:$0xff]  ;;  %v294_v5 = vld [vmem:[%s4613_s4 + $0x8] sm:$0xff] }
   0x5   :  { %2761 = vmatprep.subr.mxu1 %v296_v1  ;;  %2751 = vmatpush3.msra.mxu0 %v292_v0  ;;  %v289_v6 = vld [vmem:[%s4612_s3] sm:$0xff] }
   0x6   :  { %2762 = vmatpush3.msra.mxu1 %v296_v1  ;;  %2752 = vmatprep.subr.mxu0 %v291_v2  ;;  %v293_v7 = vld [vmem:[%s4613_s4] sm:$0xff] }
   0x7   :  { %2763 = vmatprep.subr.mxu1 %v295_v3  ;;  %2753 = vmatpush3.msra.mxu0 %v291_v2 }
   0x8   :  { %2764 = vmatpush3.msra.mxu1 %v295_v3  ;;  %2754 = vmatprep.subr.mxu0 %v290_v4 }
   0x9   :  { %2765 = vmatprep.subr.mxu1 %v294_v5  ;;  %v3298_v8 = vld [vmem:[%s4651_s27] sm:$0xff]  ;;  %2755 = vmatpush3.msra.mxu0 %v290_v4  ;;  %v3303_v9 = vld [vmem:[%s4651_s27 + $0x8] sm:$0xff] }
   0xa   :  { %2766 = vmatpush3.msra.mxu1 %v294_v5  ;;  %2756 = vmatprep.subr.mxu0 %v289_v6 }
   0xb   :  { %2767 = vmatprep.subr.mxu1 %v293_v7  ;;  %2757 = vmatpush3.msra.mxu0 %v289_v6 }
   0xc   :  { %2758 = vmatprep.mubr.msk.f32.mxu0 %vm4629_vm0, %v3298_v8 }
   0xd   :  { %22 = vsyncpa [#allocation3], 0  ;;  %2768 = vmatpush3.msra.mxu1 %v293_v7  ;;  %2769 = vmatprep.mubr.msk.f32.mxu1 %vm4629_vm0, %v3298_v8  ;;  %s4652_s0 = sld [smem:[#allocation20_spill]]  ;;  %v3175_v12 = vmov 0   ;;  %v75_v27 = vlaneseq  ;;  %vm4630_vm6 = vcmask 130048   ;;  %v3176_v35 = vmov 0.0  }
   0xe   :  { %2759 = vmatmul.mubr.msk.f32.vlgmr.msra.gmra.mxu0 %vm4629_vm0, %v3303_v9  ;;  %2770 = vmatmul.mubr.msk.f32.vlgmr.msra.gmra.mxu1 %vm4629_vm0, %v3303_v9  ;;  %v4671_v53 = vmov 0  ;;  %v4673_v56 = vmov 0  ;;  %v4677_v60 = vmov 0  ;;  %v4679_v61 = vmov 0  ;;  %v1060_v37 = vld [vmem:[%s4616_s7 + $0x8] sm:$0xff]  ;;  %v1059_v41 = vld [vmem:[%s4616_s7] sm:$0xff] }
   0xf   :  { %3007 = vset.pattern.permute.xlu0 %v3175_v12  ;;  %3008 = vset.pattern.permute.xlu1 %v3175_v12  ;;  %v3361_v28 = vand.u32 127, %v75_v27  ;;  %v3363_v29 = vshrl.u32 %v75_v27, 7  ;;  %v1066_v44 = vld [vmem:[%s4617_s8 + $0x18] sm:$0xff]  ;;  %v1064_v63 = vld [vmem:[%s4617_s8 + $0x8] sm:$0xff]  ;;  %v1063_v0 = vld [vmem:[%s4617_s8] sm:$0xff] }
  0x11   :  { %4653 = vst [vmem:[#allocation5_spill] sm:$0xff] %v3361_v28  ;;  %4654 = vst [vmem:[#allocation6_spill] sm:$0xff] %v3363_v29  ;;  %v111_v30 = vadd.s32 1, %v3361_v28  ;;  %v80_v31 = vadd.s32 16, %v3363_v29  ;;  %v3368_v32 = vmul.u32 8, %v3361_v28  ;;  %v81_v34 = vadd.s32 24, %v3363_v29 }
  0x12   :  { %v82_v38 = vadd.s32 32, %v3363_v29  ;;  %v83_v39 = vadd.s32 40, %v3363_v29  ;;  %v84_v42 = vadd.s32 48, %v3363_v29  ;;  %v85_v43 = vadd.s32 56, %v3363_v29 }
  0x13   :  { %v177_v10 = vld [vmem:[%s4652_s0] sm:$0xff]  ;;  %v179_v11 = vld [vmem:[%s4652_s0 + $0x10] sm:$0xff]  ;;  %v178_v13 = vld [vmem:[%s4652_s0 + $0x8] sm:$0xff]  ;;  %v3370_v33 = vmul.u32 8, %v111_v30  ;;  %vm97_vm1 = vcmp.le.s32.totalorder %v3368_v32, %v80_v31  ;;  %vm98_vm4 = vcmp.le.s32.totalorder %v3368_v32, %v81_v34  ;;  %v86_v46 = vadd.s32 64, %v3363_v29 }
  0x14   :  { %194 = vperm.xlu0 %3007, %v177_v10   ;;  %200 = vperm.xlu1 %3008, %v179_v11   ;;  %v180_v14 = vld [vmem:[%s4652_s0 + $0x18] sm:$0xff]  ;;  %v181_v15 = vld [vmem:[%s4652_s0 + $0x20] sm:$0xff]  ;;  %v182_v16 = vld [vmem:[%s4652_s0 + $0x28] sm:$0xff]  ;;  %vm99_vm8 = vcmp.le.s32.totalorder %v3368_v32, %v82_v38  ;;  %vm100_vm11 = vcmp.le.s32.totalorder %v3368_v32, %v83_v39  ;;  %vm101_vm14 = vcmp.le.s32.totalorder %v3368_v32, %v84_v42  ;;  %v87_v47 = vadd.s32 72, %v3363_v29 }
  0x15   :  { %v183_v17 = vld [vmem:[%s4652_s0 + $0x30] sm:$0xff]  ;;  %v184_v18 = vld [vmem:[%s4652_s0 + $0x38] sm:$0xff]  ;;  %v185_v19 = vld [vmem:[%s4652_s0 + $0x40] sm:$0xff]  ;;  %vm115_vm2 = vcmp.lt.s32.totalorder %v80_v31, %v3370_v33  ;;  %vm116_vm5 = vcmp.lt.s32.totalorder %v81_v34, %v3370_v33  ;;  %vm117_vm9 = vcmp.lt.s32.totalorder %v82_v38, %v3370_v33  ;;  %vm118_vm12 = vcmp.lt.s32.totalorder %v83_v39, %v3370_v33 }
  0x16   :  { %v186_v20 = vld [vmem:[%s4652_s0 + $0x48] sm:$0xff]  ;;  %v187_v21 = vld [vmem:[%s4652_s0 + $0x50] sm:$0xff]  ;;  %v188_v22 = vld [vmem:[%s4652_s0 + $0x58] sm:$0xff]  ;;  %vm119_vm15 = vcmp.lt.s32.totalorder %v84_v42, %v3370_v33  ;;  %v88_v50 = vadd.s32 80, %v3363_v29  ;;  %v89_v51 = vadd.s32 88, %v3363_v29  ;;  %v90_v54 = vadd.s32 96, %v3363_v29 }
  0x17   :  { %v189_v23 = vld [vmem:[%s4652_s0 + $0x60] sm:$0xff]  ;;  %v190_v24 = vld [vmem:[%s4652_s0 + $0x68] sm:$0xff]  ;;  %v191_v25 = vld [vmem:[%s4652_s0 + $0x70] sm:$0xff]  ;;  %v91_v55 = vadd.s32 104, %v3363_v29  ;;  %v92_v58 = vadd.s32 112, %v3363_v29  ;;  %v93_v59 = vadd.s32 120, %v3363_v29 }
  0x18   :  { %197 = vperm.xlu0 %3007, %v178_v13   ;;  %203 = vperm.xlu1 %3008, %v180_v14   ;;  %v192_v26 = vld [vmem:[%s4652_s0 + $0x78] sm:$0xff]  ;;  %vm131_vm3 = vmand %vm97_vm1, %vm115_vm2  ;;  %vm102_vm2 = vcmp.le.s32.totalorder %v3368_v32, %v85_v43  ;;  %vm125_vm0 = vcmp.lt.s32.totalorder %v90_v54, %v3370_v33  ;;  %v3471_v62 = vadd.s32 8, %v3363_v29  ;;  %v2468_v10 = vld [vmem:[%s4615_s6] ss:$0 sm:$0xff] }
  0x19   :  { %v3378_v36 = vsel %vm131_vm3, 1.0, %v3176_v35  ;;  %vm3380_vm7 = vmand %vm98_vm4, %vm116_vm5  ;;  %vm120_vm3 = vcmp.lt.s32.totalorder %v85_v43, %v3370_v33  ;;  %vm103_vm5 = vcmp.le.s32.totalorder %v3368_v32, %v86_v46  ;;  %v1061_v31 = vld [vmem:[%s4616_s7 + $0x10] sm:$0xff] }
  0x1a   :  { %2807 = vmatprep.mubr.msk.f32.mxu1 %vm4630_vm6, %v3378_v36  ;;  %vm3390_vm10 = vmand %vm99_vm8, %vm117_vm9  ;;  %vm121_vm8 = vcmp.lt.s32.totalorder %v86_v46, %v3370_v33  ;;  %vm126_vm6 = vcmp.lt.s32.totalorder %v91_v55, %v3370_v33  ;;  %4681 = vst [vmem:[#allocation7_spill] sm:$0xff] %v3471_v62 }
  0x1b   :  { %vm3396_vm13 = vmand %vm100_vm11, %vm118_vm12  ;;  %vm104_vm11 = vcmp.le.s32.totalorder %v3368_v32, %v87_v47  ;;  %vm122_vm12 = vcmp.lt.s32.totalorder %v87_v47, %v3370_v33  ;;  %v3530_v27 = vsel %vm3390_vm10, 1.0, %v3176_v35  ;;  %v298_v47 = vld [vmem:[%s4614_s5 + $0x8] sm:$0xff] }
  0x1c   :  { %206 = vperm.xlu0 %3007, %v181_v15   ;;  %209 = vperm.xlu1 %3008, %v182_v16   ;;  %vm3404_vm1 = vmand %vm101_vm14, %vm119_vm15  ;;  %vm105_vm15 = vcmp.le.s32.totalorder %v3368_v32, %v88_v50  ;;  %v3537_v30 = vsel %vm3396_vm13, 1.0, %v3176_v35 }
  0x1d   :  { %vm3410_vm4 = vmand %vm102_vm2, %vm120_vm3  ;;  %vm123_vm2 = vcmp.lt.s32.totalorder %v88_v50, %v3370_v33 }
  0x1e   :  { %vm3418_vm9 = vmand %vm103_vm5, %vm121_vm8  ;;  %vm106_vm5 = vcmp.le.s32.totalorder %v3368_v32, %v89_v51  ;;  %vm124_vm8 = vcmp.lt.s32.totalorder %v89_v51, %v3370_v33  ;;  %v3571_v39 = vsel %vm3410_vm4, 1.0, %v3176_v35 }
  0x1f   :  { %vm3424_vm14 = vmand %vm104_vm11, %vm122_vm12  ;;  %vm107_vm12 = vcmp.le.s32.totalorder %v3368_v32, %v90_v54  ;;  %v3582_v42 = vsel %vm3418_vm9, 1.0, %v3176_v35 }
  0x20   :  { %212 = vperm.xlu0 %3007, %v183_v17   ;;  %215 = vperm.xlu1 %3008, %v184_v18   ;;  %vm3432_vm3 = vmand %vm105_vm15, %vm123_vm2  ;;  %vm108_vm2 = vcmp.le.s32.totalorder %v3368_v32, %v91_v55  ;;  %v3606_v48 = vsel %vm3424_vm14, 1.0, %v3176_v35 }
  0x21   :  { %vm3438_vm11 = vmand %vm106_vm5, %vm124_vm8  ;;  %vm109_vm8 = vcmp.le.s32.totalorder %v3368_v32, %v92_v58  ;;  %v3614_v50 = vsel %vm3432_vm3, 1.0, %v3176_v35 }
  0x22   :  { %v4672_v53 = vsel %vm3438_vm11, 4294967295, %v4671_v53  ;;  %vm3446_vm15 = vmand %vm107_vm12, %vm125_vm0  ;;  %vm127_vm11 = vcmp.lt.s32.totalorder %v92_v58, %v3370_v33  ;;  %vm110_vm12 = vcmp.le.s32.totalorder %v3368_v32, %v93_v59 }
  0x23   :  { %v4674_v56 = vsel %vm3446_vm15, 4294967295, %v4673_v56  ;;  %vm3452_vm5 = vmand %vm108_vm2, %vm126_vm6  ;;  %vm128_vm15 = vcmp.lt.s32.totalorder %v93_v59, %v3370_v33  ;;  %vm95_vm2 = vcmp.le.s32.totalorder %v3368_v32, %v3363_v29 }
  0x24   :  { %218 = vperm.xlu0 %3007, %v185_v19   ;;  %221 = vperm.xlu1 %3008, %v186_v20   ;;  %vm3460_vm0 = vmand %vm109_vm8, %vm127_vm11  ;;  %vm113_vm11 = vcmp.lt.s32.totalorder %v3363_v29, %v3370_v33 }
  0x25   :  { %v4678_v60 = vsel %vm3460_vm0, 4294967295, %v4677_v60  ;;  %vm3466_vm6 = vmand %vm110_vm12, %vm128_vm15  ;;  %vm96_vm0 = vcmp.le.s32.totalorder %v3368_v32, %v3471_v62  ;;  %vm114_vm15 = vcmp.lt.s32.totalorder %v3471_v62, %v3370_v33  ;;  %v3548_v32 = vsel %vm3404_vm1, 1.0, %v3176_v35 }
  0x26   :  { %v4680_v61 = vsel %vm3466_vm6, 4294967295, %v4679_v61  ;;  %vm3477_vm8 = vmand %vm95_vm2, %vm113_vm11  ;;  %vm4686_vm2 = vcmask 130048  }
  0x27   :  { %vm3485_vm12 = vmand %vm96_vm0, %vm114_vm15 }
  0x28   :  { %224 = vperm.xlu0 %3007, %v187_v21   ;;  %227 = vperm.xlu1 %3008, %v188_v22   ;;  %vm4687_vm15 = vmmov %vm4686_vm2  ;;  %v3509_v21 = vsel %vm3380_vm7, 1.0, %v3176_v35  ;;  %v1062_v22 = vld [vmem:[%s4616_s7 + $0x18] sm:$0xff] }
  0x29   :  { %vm4688_vm7 = vmmov %vm4687_vm15 }
  0x2c   :  { %230 = vperm.xlu0 %3007, %v189_v23   ;;  %233 = vperm.xlu1 %3008, %v190_v24  }
  0x30   :  { %236 = vperm.xlu0 %3007, %v191_v25   ;;  %239 = vperm.xlu1 %3008, %v192_v26  }
  0x8f   :  { %v195_v1 = vpop.permute.xlu0 %194  ;;  %v201_v3 = vpop.permute.xlu1 %200 }
  0x90   :  { %vm241_vm6 = vcmp.eq.s32.totalorder %v3361_v28, %v195_v1 }
  0x91   :  { %v3491_v2 = vsel %vm241_vm6, 1.0, %v3176_v35  ;;  %vm243_vm6 = vcmp.eq.s32.totalorder %v3361_v28, %v201_v3 }
  0x92   :  { %2776 = vmatprep.mubr.msk.f32.mxu0 %vm4686_vm2, %v3491_v2  ;;  %v3516_v23 = vsel %vm243_vm6, 1.0, %v3176_v35  ;;  %vm4689_vm6 = vmmov %vm4688_vm7 }
  0x93   :  { %v198_v4 = vpop.permute.xlu0 %197  ;;  %v204_v5 = vpop.permute.xlu1 %203  ;;  %vm4691_vm10 = vmmov %vm4689_vm6 }
  0x94   :  { %vm242_vm0 = vcmp.eq.s32.totalorder %v3361_v28, %v198_v4  ;;  %vm244_vm11 = vcmp.eq.s32.totalorder %v3361_v28, %v204_v5  ;;  %vm4692_vm13 = vmmov %vm4689_vm6 }
  0x95   :  { %v3500_v16 = vsel %vm242_vm0, 1.0, %v3176_v35  ;;  %v3519_v24 = vsel %vm244_vm11, 1.0, %v3176_v35 }
  0x97   :  { %v207_v6 = vpop.permute.xlu0 %206  ;;  %v210_v7 = vpop.permute.xlu1 %209 }
  0x98   :  { %vm245_vm2 = vcmp.eq.s32.totalorder %v3361_v28, %v207_v6  ;;  %vm246_vm0 = vcmp.eq.s32.totalorder %v3361_v28, %v210_v7  ;;  %v2436_v6 = vsel %vm3477_vm8, 1.0, %v3176_v35  ;;  %v3709_v7 = vsel %vm3485_vm12, 1.0, %v3176_v35 }
  0x99   :  { %v3524_v26 = vsel %vm245_vm2, 1.0, %v3176_v35  ;;  %v3551_v34 = vsel %vm246_vm0, 1.0, %v3176_v35  ;;  %vm4693_vm2 = vmmov %vm4689_vm6 }
  0x9a   :  { %vm4696_vm4 = vmmov %vm4693_vm2 }
  0x9b   :  { %v213_v11 = vpop.permute.xlu0 %212  ;;  %v216_v15 = vpop.permute.xlu1 %215  ;;  %vm4700_vm14 = vmmov %vm4693_vm2 }
  0x9c   :  { %vm247_vm11 = vcmp.eq.s32.totalorder %v3361_v28, %v213_v11  ;;  %vm248_vm1 = vcmp.eq.s32.totalorder %v3361_v28, %v216_v15  ;;  %vm4701_vm3 = vmmov %vm4693_vm2  ;;  %v3739_v11 = vld [vmem:[%s4611_s2 + $0x10] sm:$0xff]  ;;  %v3787_v15 = vld [vmem:[%s4611_s2 + $0x40] sm:$0xff] }
  0x9d   :  { %v3563_v38 = vsel %vm247_vm11, 1.0, %v3176_v35  ;;  %v3585_v43 = vsel %vm248_vm1, 1.0, %v3176_v35  ;;  %vm4697_vm11 = vmmov %vm4693_vm2  ;;  %4735 = vst [vmem:[#allocation12_spill] sm:$0xff] %v3787_v15 }
  0x9f   :  { %v219_v20 = vpop.permute.xlu0 %218  ;;  %v222_v25 = vpop.permute.xlu1 %221 }
  0xa0   :  { %vm249_vm0 = vcmp.eq.s32.totalorder %v3361_v28, %v219_v20  ;;  %vm250_vm9 = vcmp.eq.s32.totalorder %v3361_v28, %v222_v25  ;;  %v3815_v20 = vld [vmem:[%s4611_s2 + $0x60] sm:$0xff]  ;;  %v3829_v25 = vld [vmem:[%s4611_s2 + $0x70] sm:$0xff] }
  0xa1   :  { %v3595_v45 = vsel %vm249_vm0, 1.0, %v3176_v35  ;;  %v3617_v51 = vsel %vm250_vm9, 1.0, %v3176_v35  ;;  %vm4706_vm9 = vmmov %vm4693_vm2  ;;  %4743 = vst [vmem:[#allocation16_spill] sm:$0xff] %v3815_v20 }
  0xa2   :  { %4747 = vst [vmem:[#allocation18_spill] sm:$0xff] %v3829_v25 }
  0xa3   :  { %v225_v33 = vpop.permute.xlu0 %224  ;;  %v228_v40 = vpop.permute.xlu1 %227 }
  0xa4   :  { %vm252_vm1 = vcmp.eq.s32.totalorder %v3361_v28, %v228_v40 }
  0xa5   :  { %v3643_v59 = vsel %vm252_vm1, 1.0, %v3176_v35  ;;  %vm4709_vm1 = vmmov %vm4693_vm2 }
  0xa6   :  { %vm4722_vm12 = vmmov %vm4709_vm1 }
  0xa7   :  { %v231_v46 = vpop.permute.xlu0 %230  ;;  %v234_v49 = vpop.permute.xlu1 %233 }
  0xa8   :  { %vm253_vm0 = vcmp.eq.s32.totalorder %v3361_v28, %v231_v46 }
  0xab   :  { %v237_v58 = vpop.permute.xlu0 %236  ;;  %v240_v1 = vpop.permute.xlu1 %239 }
  0xce   :  { %v2760_v12 = vpop.f32.mrf.mxu0  ;;  %v2771_v13 = vpop.f32.mrf.mxu1 }
  0xcf   :  { %v385_v14 = vadd.f32 %v2760_v12, %v2468_v10  ;;  %2772 = vmatprep.subr.mxu0 %v2771_v13  ;;  %v3752_v12 = vld [vmem:[%s4611_s2 + $0x18] sm:$0xff] }
  0xd0   :  { %v379_v17 = vpop.f32.mrf.mxu0  ;;  %v454_v18 = vpop.f32.mrf.mxu1  ;;  %2773 = vmatpush3.msra.mxu0 %v2771_v13  ;;  %v3757_v13 = vld [vmem:[%s4611_s2 + $0x20] sm:$0xff] }
  0xd1   :  { %v380_v19 = vadd.f32 %v2468_v10, %v379_v17  ;;  %2774 = vmatprep.subr.mxu0 %v454_v18  ;;  %2997 = vmatprep.subr.mxu1 %v385_v14  ;;  %v297_v10 = vld [vmem:[%s4614_s5] sm:$0xff]  ;;  %4726 = vst [vmem:[#allocation8_spill] sm:$0xff] %v3757_v13  ;;  %v3796_v17 = vld [vmem:[%s4611_s2 + $0x48] sm:$0xff] }
  0xd2   :  { %2775 = vmatpush3.msra.mxu0 %v454_v18  ;;  %2999 = vmatpush3.msra.mxu1 %v385_v14  ;;  %4738 = vst [vmem:[#allocation13_spill] sm:$0xff] %v3796_v17  ;;  %v3801_v18 = vld [vmem:[%s4611_s2 + $0x50] sm:$0xff] }
  0xd3   :  { %2777 = vmatmul.mubr.msk.f32.vlgmr.msra.gmra.mxu0 %vm4687_vm15, %v3500_v16  ;;  %2800 = vmatprep.subr.mxu0 %v385_v14  ;;  %vm4690_vm15 = vmmov %vm4689_vm6  ;;  %4739 = vst [vmem:[#allocation14_spill] sm:$0xff] %v3801_v18 }
  0xd4   :  { %2998 = vmatprep.subr.mxu1 %v380_v19  ;;  %2801 = vmatpush3.msra.mxu0 %v385_v14  ;;  %v3773_v14 = vld [vmem:[%s4611_s2 + $0x30] sm:$0xff] }
  0xd5   :  { %3000 = vmatpush3.msra.mxu1 %v380_v19  ;;  %2802 = vmatprep.subr.mxu0 %v380_v19  ;;  %4731 = vst [vmem:[#allocation10_spill] sm:$0xff] %v3773_v14 }
  0xd6   :  { %2808 = vmatmul.mubr.msk.f32.vlgmr.msra.gmra.mxu1 %vm4688_vm7, %v3509_v21  ;;  %2856 = vmatprep.subr.mxu1 %v1062_v22  ;;  %vm4694_vm7 = vmmov %vm4693_vm2 }
  0xd7   :  { %2779 = vmatprep.mubr.msk.f32.mxu0 %vm4689_vm6, %v3516_v23  ;;  %2803 = vmatpush3.msra.mxu0 %v380_v19  ;;  %vm4695_vm6 = vmmov %vm4693_vm2  ;;  %v3810_v19 = vld [vmem:[%s4611_s2 + $0x58] sm:$0xff] }
  0xd8   :  { %2857 = vmatpush3.msra.mxu1 %v1062_v22  ;;  %2780 = vmatmul.mubr.msk.f32.gmra.mxu0 %vm4690_vm15, %v3519_v24  ;;  %vm4698_vm15 = vmmov %vm4693_vm2  ;;  %4742 = vst [vmem:[#allocation15_spill] sm:$0xff] %v3810_v19  ;;  %v3824_v22 = vld [vmem:[%s4611_s2 + $0x68] sm:$0xff] }
  0xd9   :  { %2810 = vmatprep.mubr.msk.f32.mxu1 %vm4691_vm10, %v3530_v27  ;;  %2782 = vmatprep.mubr.msk.f32.mxu0 %vm4692_vm13, %v3524_v26  ;;  %vm251_vm10 = vcmp.eq.s32.totalorder %v3361_v28, %v225_v33  ;;  %vm4699_vm13 = vmmov %vm4693_vm2  ;;  %4746 = vst [vmem:[#allocation17_spill] sm:$0xff] %v3824_v22 }
  0xda   :  { %2811 = vmatmul.mubr.msk.f32.gmra.mxu1 %vm4693_vm2, %v3537_v30  ;;  %2858 = vmatprep.subr.mxu1 %v1061_v31  ;;  %v3624_v54 = vsel %vm251_vm10, 1.0, %v3176_v35  ;;  %vm4707_vm10 = vmmov %vm4693_vm2 }
  0xdb   :  { %2813 = vmatprep.mubr.msk.f32.mxu1 %vm4694_vm7, %v3548_v32  ;;  %2859 = vmatpush3.msra.mxu1 %v1061_v31  ;;  %vm4702_vm7 = vnez %v4672_v53  ;;  %v3650_v53 = vsel %vm253_vm0, 1.0, %v3176_v35  ;;  %vm4712_vm0 = vnez %v4680_v61  ;;  %v1065_v61 = vld [vmem:[%s4617_s8 + $0x10] sm:$0xff]  ;;  %v3838_v31 = vld [vmem:[%s4611_s2 + $0x78] sm:$0xff] }
  0xdc   :  { %2783 = vmatmul.mubr.msk.f32.gmra.mxu0 %vm4695_vm6, %v3551_v34  ;;  %2860 = vmatprep.subr.mxu1 %v1060_v37  ;;  %v3632_v52 = vsel %vm4702_vm7, 1.0, %v3176_v35  ;;  %vm4703_vm6 = vmmov %vm4693_vm2  ;;  %4750 = vst [vmem:[#allocation19_spill] sm:$0xff] %v3838_v31 }
  0xdd   :  { %2785 = vmatprep.mubr.msk.f32.mxu0 %vm4696_vm4, %v3563_v38  ;;  %2861 = vmatpush3.msra.mxu1 %v1060_v37  ;;  %vm4704_vm4 = vnez %v4674_v56  ;;  %v3658_v56 = vsel %vm3452_vm5, 1.0, %v3176_v35  ;;  %vm4710_vm5 = vmmov %vm4709_vm1 }
  0xde   :  { %2814 = vmatmul.mubr.msk.f32.gmra.mxu1 %vm4697_vm11, %v3571_v39  ;;  %2862 = vmatprep.subr.mxu1 %v1059_v41  ;;  %v3640_v55 = vsel %vm4704_vm4, 1.0, %v3176_v35  ;;  %vm4705_vm11 = vmmov %vm4693_vm2 }
  0xdf   :  { %2816 = vmatprep.mubr.msk.f32.mxu1 %vm4698_vm15, %v3582_v42  ;;  %2863 = vmatpush3.msra.mxu1 %v1059_v41  ;;  %vm254_vm15 = vcmp.eq.s32.totalorder %v3361_v28, %v234_v49  ;;  %vm4711_vm7 = vmmov %vm4709_vm1 }
  0xe0   :  { %2786 = vmatmul.mubr.msk.f32.gmra.mxu0 %vm4699_vm13, %v3585_v43  ;;  %2867 = vmatprep.subr.mxu1 %v1066_v44  ;;  %vm255_vm13 = vcmp.eq.s32.totalorder %v3361_v28, %v237_v58  ;;  %v3669_v4 = vsel %vm254_vm15, 1.0, %v3176_v35  ;;  %vm4714_vm4 = vmmov %vm4709_vm1 }
  0xe1   :  { %2788 = vmatprep.mubr.msk.f32.mxu0 %vm4693_vm2, %v3595_v45  ;;  %2828 = vmatprep.subr.mxu0 %v298_v47  ;;  %v3676_v57 = vsel %vm255_vm13, 1.0, %v3176_v35  ;;  %vm4717_vm15 = vmmov %vm4709_vm1 }
  0xe2   :  { %2817 = vmatmul.mubr.msk.f32.gmra.mxu1 %vm4700_vm14, %v3606_v48  ;;  %vm4708_vm14 = vnez %v4678_v60  ;;  %v3684_v60 = vsel %vm4712_vm0, 1.0, %v3176_v35 }
  0xe3   :  { %2819 = vmatprep.mubr.msk.f32.mxu1 %vm4701_vm3, %v3614_v50  ;;  %v3666_v3 = vsel %vm4708_vm14, 1.0, %v3176_v35  ;;  %vm256_vm3 = vcmp.eq.s32.totalorder %v3361_v28, %v240_v1  ;;  %vm4723_vm14 = vmmov %vm4709_vm1 }
  0xe4   :  { %2789 = vmatmul.mubr.msk.f32.gmra.mxu0 %vm4703_vm6, %v3617_v51  ;;  %vm4713_vm6 = vmmov %vm4709_vm1  ;;  %v3689_v5 = vsel %vm256_vm3, 1.0, %v3176_v35  ;;  %v3726_v35 = vld [vmem:[%s4611_s2] sm:$0xff] }
  0xe5   :  { %2791 = vmatprep.mubr.msk.f32.mxu0 %vm4705_vm11, %v3624_v54  ;;  %vm4715_vm11 = vmmov %vm4709_vm1 }
  0xe6   :  { %2820 = vmatmul.mubr.msk.f32.gmra.mxu1 %vm4706_vm9, %v3632_v52  ;;  %vm4716_vm9 = vcmask 261120  }
  0xe7   :  { %2822 = vmatprep.mubr.msk.f32.mxu1 %vm4707_vm10, %v3640_v55  ;;  %vm4718_vm10 = vmmov %vm4709_vm1 }
  0xe8   :  { %2792 = vmatmul.mubr.msk.f32.gmra.mxu0 %vm4693_vm2, %v3643_v59  ;;  %vm4719_vm13 = vmmov %vm4716_vm9 }
  0xe9   :  { %2794 = vmatprep.mubr.msk.f32.mxu0 %vm4709_vm1, %v3650_v53  ;;  %vm4720_vm8 = vmmov %vm4716_vm9 }
  0xea   :  { %2823 = vmatmul.mubr.msk.f32.gmra.mxu1 %vm4710_vm5, %v3658_v56  ;;  %vm4721_vm2 = vmmov %vm4709_vm1 }
  0xeb   :  { %2825 = vmatprep.mubr.msk.f32.mxu1 %vm4711_vm7, %v3666_v3  ;;  %vm4724_vm1 = vmmov %vm4720_vm8 }
  0xec   :  { %2795 = vmatmul.mubr.msk.f32.gmra.mxu0 %vm4713_vm6, %v3669_v4  ;;  %vm4725_vm5 = vmmov %vm4721_vm2 }
  0xed   :  { %2797 = vmatprep.mubr.msk.f32.mxu0 %vm4714_vm4, %v3676_v57  ;;  %vm4727_vm3 = vmmov %vm4721_vm2 }
  0xee   :  { %2826 = vmatmul.mubr.msk.f32.gmra.mxu1 %vm4715_vm11, %v3684_v60  ;;  %vm4728_vm7 = vmmov %vm4721_vm2 }
  0xef   :  { %2864 = vmatprep.mubr.msk.f32.mxu1 %vm4716_vm9, %v3298_v8  ;;  %vm4729_vm0 = vmmov %vm4721_vm2 }
  0xf0   :  { %2798 = vmatmul.mubr.msk.f32.gmra.mxu0 %vm4717_vm15, %v3689_v5  ;;  %vm4732_vm6 = vmmov %vm4729_vm0 }
  0xf1   :  { %2804 = vmatprep.mubr.msk.f32.mxu0 %vm4718_vm10, %v2436_v6  ;;  %vm4733_vm4 = vmmov %vm4729_vm0 }
  0xf2   :  { %2865 = vmatmul.mubr.msk.f32.vlgmr.msra.gmra.mxu1 %vm4719_vm13, %v3303_v9  ;;  %vm4736_vm11 = vmmov %vm4729_vm0 }
  0xf3   :  { %2868 = vmatpush3.msra.mxu1 %v1066_v44  ;;  %2875 = vmatprep.mubr.msk.f32.mxu1 %vm4720_vm8, %v3298_v8  ;;  %v3734_v8 = vld [vmem:[%s4611_s2 + $0x8] sm:$0xff]  ;;  %vm4737_vm9 = vmmov %vm4729_vm0 }
  0xf4   :  { %2869 = vmatprep.subr.mxu1 %v1065_v61  ;;  %2805 = vmatmul.mubr.msk.f32.vlgmr.msra.gmra.mxu0 %vm4721_vm2, %v3709_v7  ;;  %vm4740_vm15 = vmmov %vm4729_vm0 }
  0xf5   :  { %2870 = vmatpush3.msra.mxu1 %v1065_v61  ;;  %2829 = vmatpush3.msra.mxu0 %v298_v47  ;;  %vm4741_vm10 = vmmov %vm4729_vm0 }
  0xf6   :  { %2871 = vmatprep.subr.mxu1 %v1064_v63  ;;  %2830 = vmatprep.subr.mxu0 %v297_v10  ;;  %vm4744_vm13 = vmmov %vm4729_vm0 }
  0xf7   :  { %2872 = vmatpush3.msra.mxu1 %v1064_v63  ;;  %2831 = vmatpush3.msra.mxu0 %v297_v10  ;;  %vm4745_vm8 = vmmov %vm4729_vm0 }
  0xf8   :  { %2832 = vmatprep.mubr.msk.f32.mxu0 %vm4722_vm12, %v3726_v35  ;;  %2873 = vmatprep.subr.mxu1 %v1063_v0  ;;  %vm4748_vm2 = vmmov %vm4729_vm0 }
  0xf9   :  { %2833 = vmatmul.mubr.msk.f32.vlgmr.msra.gmra.mxu0 %vm4723_vm14, %v3734_v8  ;;  %2874 = vmatpush3.msra.mxu1 %v1063_v0  ;;  %vm4749_vm12 = vmmov %vm4729_vm0 }
  0xfa   :  { %2876 = vmatmul.mubr.msk.f32.vlgmr.msra.gmra.mxu1 %vm4724_vm1, %v3303_v9  ;;  %2835 = vmatprep.mubr.msk.f32.mxu0 %vm4725_vm5, %v3739_v11  ;;  %v3768_v9 = vld [vmem:[%s4611_s2 + $0x28] sm:$0xff]  ;;  %vm4751_vm14 = vmmov %vm4729_vm0 }
  0xfb   :  { %2882 = vmatprep.mubr.msk.f32.mxu1 %vm4727_vm3, %v3491_v2  ;;  %4730 = vst [vmem:[#allocation9_spill] sm:$0xff] %v3768_v9  ;;  %v3782_v2 = vld [vmem:[%s4611_s2 + $0x38] sm:$0xff]  ;;  %vm4752_vm1 = vmmov %vm4729_vm0 }
  0xfc   :  { %4734 = vst [vmem:[#allocation11_spill] sm:$0xff] %v3782_v2  ;;  %vm4753_vm5 = vmmov %vm4729_vm0 }
  0xfd   :  { %2836 = vmatmul.mubr.msk.f32.gmra.mxu0 %vm4728_vm7, %v3752_v12  ;;  %vm4754_vm3 = vmmov %vm4729_vm0  ;;  %vm4755_vm7 = vcmask 261120  }
  0xfe   :  { %2838 = vmatprep.mubr.msk.f32.mxu0 %vm4729_vm0, %v3757_v13 }
 0x101   :  { %2839 = vmatmul.mubr.msk.f32.gmra.mxu0 %vm4732_vm6, %v3768_v9  ;;  %vm4756_vm6 = vmmov %vm4755_vm7 }
 0x102   :  { %2841 = vmatprep.mubr.msk.f32.mxu0 %vm4733_vm4, %v3773_v14  ;;  %vm4757_vm4 = vmmov %vm4729_vm0 }
 0x105   :  { %2842 = vmatmul.mubr.msk.f32.gmra.mxu0 %vm4736_vm11, %v3782_v2  ;;  %vm4758_vm11 = vmmov %vm4729_vm0 }
 0x106   :  { %2844 = vmatprep.mubr.msk.f32.mxu0 %vm4737_vm9, %v3787_v15  ;;  %vm4759_vm9 = vmmov %vm4729_vm0 }
 0x109   :  { %2845 = vmatmul.mubr.msk.f32.gmra.mxu0 %vm4740_vm15, %v3796_v17  ;;  %vm4760_vm15 = vmmov %vm4729_vm0 }
 0x10a   :  { %2847 = vmatprep.mubr.msk.f32.mxu0 %vm4741_vm10, %v3801_v18  ;;  %vm4761_vm10 = vmmov %vm4756_vm6 }
 0x10d   :  { %2848 = vmatmul.mubr.msk.f32.gmra.mxu0 %vm4744_vm13, %v3810_v19  ;;  %vm4762_vm13 = vmmov %vm4729_vm0 }
 0x10e   :  { %2850 = vmatprep.mubr.msk.f32.mxu0 %vm4745_vm8, %v3815_v20  ;;  %vm4763_vm8 = vmmov %vm4729_vm0 }
 0x111   :  { %2851 = vmatmul.mubr.msk.f32.gmra.mxu0 %vm4748_vm2, %v3824_v22  ;;  %vm4764_vm2 = vmmov %vm4756_vm6 }
 0x112   :  { %2853 = vmatprep.mubr.msk.f32.mxu0 %vm4749_vm12, %v3829_v25  ;;  %vm4765_vm12 = vmmov %vm4729_vm0 }
 0x115   :  { %2854 = vmatmul.mubr.msk.f32.gmra.mxu0 %vm4751_vm14, %v3838_v31  ;;  %vm4766_vm14 = vmmov %vm4729_vm0 }
 0x116   :  { %2910 = vmatprep.mubr.msk.f32.mxu0 %vm4752_vm1, %v2436_v6  ;;  %vm4767_vm1 = vmmov %vm4764_vm2 }
 0x193   :  { %v2778_v33 = vpop.f32.mrf.mxu0 }
 0x195   :  { %v578_v37 = vpop.f32.mrf.mxu0 }
 0x196   :  { %v2809_v40 = vpop.f32.mrf.mxu1 }
 0x198   :  { %v2781_v41 = vpop.f32.mrf.mxu0  ;;  %v781_v44 = vpop.f32.mrf.mxu1 }
 0x199   :  { %v3843_v46 = vadd.f32 %v2809_v40, %v2781_v41 }
 0x19a   :  { %v588_v47 = vpop.f32.mrf.mxu0  ;;  %v2812_v49 = vpop.f32.mrf.mxu1 }
 0x19b   :  { %v3845_v58 = vadd.f32 %v781_v44, %v588_v47 }
 0x19c   :  { %v2784_v1 = vpop.f32.mrf.mxu0  ;;  %v791_v61 = vpop.f32.mrf.mxu1 }
 0x19d   :  { %v3847_v63 = vadd.f32 %v2812_v49, %v2784_v1 }
 0x19e   :  { %v598_v10 = vpop.f32.mrf.mxu0  ;;  %v2815_v0 = vpop.f32.mrf.mxu1 }
 0x19f   :  { %v3849_v62 = vadd.f32 %v791_v61, %v598_v10 }
 0x1a0   :  { %v2787_v6 = vpop.f32.mrf.mxu0  ;;  %v801_v28 = vpop.f32.mrf.mxu1 }
 0x1a1   :  { %v3851_v29 = vadd.f32 %v2815_v0, %v2787_v6 }
 0x1a2   :  { %v608_v31 = vpop.f32.mrf.mxu0  ;;  %v2818_v25 = vpop.f32.mrf.mxu1 }
 0x1a3   :  { %v3853_v40 = vadd.f32 %v801_v28, %v608_v31 }
 0x1a4   :  { %v2790_v41 = vpop.f32.mrf.mxu0  ;;  %v811_v22 = vpop.f32.mrf.mxu1 }
 0x1a5   :  { %v3855_v44 = vadd.f32 %v2818_v25, %v2790_v41 }
 0x1a6   :  { %v618_v47 = vpop.f32.mrf.mxu0  ;;  %v2821_v20 = vpop.f32.mrf.mxu1 }
 0x1a7   :  { %v3857_v49 = vadd.f32 %v811_v22, %v618_v47  ;;  %v2521_v22 = vld [vmem:[%s4619_s10] ss:$0 sm:$0xff] }
 0x1a8   :  { %v2793_v1 = vpop.f32.mrf.mxu0  ;;  %v821_v19 = vpop.f32.mrf.mxu1 }
 0x1a9   :  { %v3859_v61 = vadd.f32 %v2821_v20, %v2793_v1 }
 0x1aa   :  { %v628_v10 = vpop.f32.mrf.mxu0  ;;  %v2824_v18 = vpop.f32.mrf.mxu1 }
 0x1ab   :  { %v3861_v0 = vadd.f32 %v821_v19, %v628_v10 }
 0x1ac   :  { %v2796_v6 = vpop.f32.mrf.mxu0  ;;  %v831_v17 = vpop.f32.mrf.mxu1 }
 0x1ad   :  { %v3863_v28 = vadd.f32 %v2824_v18, %v2796_v6 }
 0x1ae   :  { %v638_v31 = vpop.f32.mrf.mxu0  ;;  %v2827_v15 = vpop.f32.mrf.mxu1 }
 0x1af   :  { %v3865_v25 = vadd.f32 %v831_v17, %v638_v31 }
 0x1b0   :  { %v2799_v41 = vpop.f32.mrf.mxu0  ;;  %v841_v2 = vpop.f32.mrf.mxu1 }
 0x1b1   :  { %v3870_v20 = vadd.f32 %v2827_v15, %v2799_v41 }
 0x1b2   :  { %v648_v47 = vpop.f32.mrf.mxu0  ;;  %v2866_v1 = vpop.f32.mrf.mxu1 }
 0x1b3   :  { %v3872_v19 = vadd.f32 %v841_v2, %v648_v47  ;;  %v1148_v10 = vadd.f32 %v2866_v1, %v2521_v22 }
 0x1b4   :  { %v2806_v14 = vpop.f32.mrf.mxu0  ;;  %v1142_v18 = vpop.f32.mrf.mxu1 }
 0x1b5   :  { %v1143_v6 = vadd.f32 %v2521_v22, %v1142_v18  ;;  %2906 = vmatprep.subr.mxu0 %v1148_v10  ;;  %v777_v9 = vadd.f32 %v2806_v14, %v2778_v33 }
 0x1b6   :  { %v771_v17 = vpop.f32.mrf.mxu0  ;;  %2907 = vmatpush3.msra.mxu0 %v1148_v10 }
 0x1b7   :  { %2908 = vmatprep.subr.mxu0 %v1143_v6  ;;  %v772_v31 = vadd.f32 %v771_v17, %v578_v37  ;;  %v1068_v37 = vld [vmem:[%s4618_s9 + $0x8] sm:$0xff] }
 0x1b8   :  { %2909 = vmatpush3.msra.mxu0 %v1143_v6 }
 0x1b9   :  { %v2834_v13 = vpop.f32.mrf.mxu0  ;;  %2911 = vmatmul.mubr.msk.f32.vlgmr.msra.gmra.mxu0 %vm4753_vm5, %v3709_v7  ;;  %vm4768_vm5 = vmmov %vm4729_vm0 }
 0x1ba   :  { %v3876_v15 = vadd.f32 %v2834_v13, %v777_v9  ;;  %v2877_v41 = vpop.f32.mrf.mxu1  ;;  %2913 = vmatprep.mubr.msk.f32.mxu0 %vm4754_vm3, %v3378_v36  ;;  %v1067_v13 = vld [vmem:[%s4618_s9] sm:$0xff]  ;;  %vm4769_vm3 = vmmov %vm4729_vm0 }
 0x1bb   :  { %v964_v2 = vpop.f32.mrf.mxu0  ;;  %2878 = vmatprep.subr.mxu1 %v2877_v41 }
 0x1bc   :  { %v1680_v14 = vsel %vm4755_vm7, %v3876_v15, 0.0  ;;  %v3882_v33 = vadd.f32 %v964_v2, %v772_v31  ;;  %v1217_v22 = vpop.f32.mrf.mxu1  ;;  %2879 = vmatpush3.msra.mxu1 %v2877_v41  ;;  %vm4770_vm7 = vmmov %vm4767_vm1 }
 0x1bd   :  { %v2837_v7 = vpop.f32.mrf.mxu0  ;;  %2880 = vmatprep.subr.mxu1 %v1217_v22  ;;  %2914 = vmatmul.mubr.msk.f32.gmra.mxu0 %vm4729_vm0, %v3509_v21 }
 0x1be   :  { %v1679_v36 = vsel %vm4756_vm6, %v3882_v33, 0.0  ;;  %2881 = vmatpush3.msra.mxu1 %v1217_v22  ;;  %2916 = vmatprep.mubr.msk.f32.mxu0 %vm4757_vm4, %v3530_v27  ;;  %v3899_v1 = vadd.f32 %v2837_v7, %v3843_v46  ;;  %vm4771_vm6 = vmmov %vm4729_vm0 }
 0x1bf   :  { %v1681_v9 = vadd.f32 %v1680_v14, %v1679_v36  ;;  %v974_v47 = vpop.f32.mrf.mxu0  ;;  %2883 = vmatmul.mubr.msk.f32.vlgmr.msra.gmra.mxu1 %vm4758_vm11, %v3500_v16  ;;  %2934 = vmatprep.subr.mxu1 %v1068_v37  ;;  %vm4772_vm4 = vmmov %vm4767_vm1 }
 0x1c0   :  { %v3902_v21 = vadd.f32 %v974_v47, %v3845_v58  ;;  %2885 = vmatprep.mubr.msk.f32.mxu1 %vm4759_vm9, %v3516_v23  ;;  %2935 = vmatpush3.msra.mxu1 %v1068_v37  ;;  %v1684_v23 = vsel %vm4764_vm2, %v3899_v1, 0.0  ;;  %vm4773_vm11 = vmmov %vm4729_vm0 }
 0x1c1   :  { %v2840_v27 = vpop.f32.mrf.mxu0  ;;  %2917 = vmatmul.mubr.msk.f32.gmra.mxu0 %vm4760_vm15, %v3537_v30  ;;  %2936 = vmatprep.subr.mxu1 %v1067_v13  ;;  %vm4774_vm9 = vmmov %vm4729_vm0 }
 0x1c2   :  { %v1682_v10 = vsel %vm4761_vm10, %v3902_v21, 0.0  ;;  %2919 = vmatprep.mubr.msk.f32.mxu0 %vm4762_vm13, %v3548_v32  ;;  %2937 = vmatpush3.msra.mxu1 %v1067_v13  ;;  %v3917_v58 = vadd.f32 %v2840_v27, %v3847_v63  ;;  %vm4775_vm15 = vmmov %vm4767_vm1 }
 0x1c3   :  { %v1683_v16 = vadd.f32 %v1682_v10, %v1681_v9  ;;  %v984_v46 = vpop.f32.mrf.mxu0  ;;  %2886 = vmatmul.mubr.msk.f32.gmra.mxu1 %vm4763_vm8, %v3519_v24  ;;  %vm4776_vm10 = vmmov %vm4729_vm0 }
 0x1c4   :  { %v3920_v30 = vadd.f32 %v984_v46, %v3849_v62  ;;  %2888 = vmatprep.mubr.msk.f32.mxu1 %vm4765_vm12, %v3524_v26  ;;  %v1688_v62 = vsel %vm4770_vm7, %v3917_v58, 0.0  ;;  %vm4777_vm13 = vmmov %vm4729_vm0 }
 0x1c5   :  { %v1685_v18 = vadd.f32 %v1684_v23, %v1683_v16  ;;  %v2843_v32 = vpop.f32.mrf.mxu0  ;;  %2920 = vmatmul.mubr.msk.f32.gmra.mxu0 %vm4766_vm14, %v3571_v39  ;;  %vm4778_vm8 = vmmov %vm4767_vm1  ;;  %v4802_v16 = vld [vmem:[#allocation9_spill] sm:$0xff]  ;;  %v4805_v23 = vld [vmem:[#allocation11_spill] sm:$0xff] }
 0x1c6   :  { %v1686_v24 = vsel %vm4767_vm1, %v3920_v30, 0.0  ;;  %2922 = vmatprep.mubr.msk.f32.mxu0 %vm4768_vm5, %v3582_v42  ;;  %v3935_v26 = vadd.f32 %v2843_v32, %v3851_v29  ;;  %vm4779_vm2 = vmmov %vm4729_vm0 }
 0x1c7   :  { %v1687_v6 = vadd.f32 %v1686_v24, %v1685_v18  ;;  %v994_v63 = vpop.f32.mrf.mxu0  ;;  %2889 = vmatmul.mubr.msk.f32.gmra.mxu1 %vm4769_vm3, %v3551_v34  ;;  %vm4780_vm12 = vmmov %vm4729_vm0 }
 0x1c8   :  { %v3938_v17 = vadd.f32 %v994_v63, %v3853_v40  ;;  %2891 = vmatprep.mubr.msk.f32.mxu1 %vm4729_vm0, %v3563_v38  ;;  %v1692_v40 = vsel %vm4775_vm15, %v3935_v26, 0.0  ;;  %vm4781_vm14 = vmmov %vm4767_vm1 }
 0x1c9   :  { %v1689_v39 = vadd.f32 %v1688_v62, %v1687_v6  ;;  %v2846_v31 = vpop.f32.mrf.mxu0  ;;  %2923 = vmatmul.mubr.msk.f32.gmra.mxu0 %vm4771_vm6, %v3606_v48  ;;  %vm4782_vm1 = vmmov %vm4729_vm0 }
 0x1ca   :  { %v1690_v34 = vsel %vm4772_vm4, %v3938_v17, 0.0  ;;  %2925 = vmatprep.mubr.msk.f32.mxu0 %vm4773_vm11, %v3614_v50  ;;  %v3953_v38 = vadd.f32 %v2846_v31, %v3855_v44  ;;  %vm4783_vm5 = vmmov %vm4729_vm0 }
 0x1cb   :  { %v1691_v42 = vadd.f32 %v1690_v34, %v1689_v39  ;;  %v1004_v29 = vpop.f32.mrf.mxu0  ;;  %2892 = vmatmul.mubr.msk.f32.gmra.mxu1 %vm4774_vm9, %v3585_v43  ;;  %vm4784_vm3 = vmmov %vm4772_vm4  ;;  %v4811_v34 = vld [vmem:[#allocation14_spill] sm:$0xff] }
 0x1cc   :  { %v3956_v41 = vadd.f32 %v1004_v29, %v3857_v49  ;;  %2894 = vmatprep.mubr.msk.f32.mxu1 %vm4776_vm10, %v3595_v45  ;;  %v1696_v49 = vsel %vm4781_vm14, %v3953_v38, 0.0  ;;  %vm4785_vm7 = vmmov %vm4729_vm0 }
 0x1cd   :  { %v1693_v48 = vadd.f32 %v1692_v40, %v1691_v42  ;;  %v2849_v2 = vpop.f32.mrf.mxu0  ;;  %2926 = vmatmul.mubr.msk.f32.gmra.mxu0 %vm4777_vm13, %v3632_v52  ;;  %vm4786_vm6 = vmmov %vm4784_vm3 }
 0x1ce   :  { %v1694_v43 = vsel %vm4778_vm8, %v3956_v41, 0.0  ;;  %2928 = vmatprep.mubr.msk.f32.mxu0 %vm4779_vm2, %v3640_v55  ;;  %v1054_v45 = vadd.f32 %v2849_v2, %v3859_v61  ;;  %vm4787_vm4 = vmmov %vm4729_vm0 }
 0x1cf   :  { %v1695_v50 = vadd.f32 %v1694_v43, %v1693_v48  ;;  %v1014_v44 = vpop.f32.mrf.mxu0  ;;  %2895 = vmatmul.mubr.msk.f32.gmra.mxu1 %vm4780_vm12, %v3617_v51  ;;  %vm4788_vm11 = vmmov %vm4729_vm0 }
 0x1d0   :  { %v1053_v14 = vadd.f32 %v1014_v44, %v3861_v0  ;;  %2897 = vmatprep.mubr.msk.f32.mxu1 %vm4782_vm1, %v3624_v54  ;;  %v1700_v61 = vsel %vm4786_vm6, %v1054_v45, 0.0  ;;  %vm4789_vm9 = vmmov %vm4784_vm3 }
 0x1d1   :  { %v1697_v52 = vadd.f32 %v1696_v49, %v1695_v50  ;;  %v2852_v22 = vpop.f32.mrf.mxu0  ;;  %2929 = vmatmul.mubr.msk.f32.gmra.mxu0 %vm4783_vm5, %v3658_v56  ;;  %vm4790_vm15 = vmmov %vm4729_vm0 }
 0x1d2   :  { %v1698_v55 = vsel %vm4784_vm3, %v1053_v14, 0.0  ;;  %2931 = vmatprep.mubr.msk.f32.mxu0 %vm4785_vm7, %v3666_v3  ;;  %v1056_v0 = vadd.f32 %v2852_v22, %v3863_v28  ;;  %vm4791_vm10 = vmmov %vm4784_vm3 }
 0x1d3   :  { %v1699_v51 = vadd.f32 %v1698_v55, %v1697_v52  ;;  %v1024_v37 = vpop.f32.mrf.mxu0  ;;  %2898 = vmatmul.mubr.msk.f32.gmra.mxu1 %vm4729_vm0, %v3643_v59  ;;  %vm4792_vm13 = vmmov %vm4729_vm0  ;;  %v4821_v52 = vld [vmem:[#allocation18_spill] sm:$0xff] }
 0x1d4   :  { %v1055_v54 = vadd.f32 %v1024_v37, %v3865_v25  ;;  %2900 = vmatprep.mubr.msk.f32.mxu1 %vm4787_vm4, %v3650_v53  ;;  %v1704_v59 = vsel %vm4791_vm10, %v1056_v0, 0.0  ;;  %vm4793_vm8 = vmmov %vm4784_vm3 }
 0x1d5   :  { %v1701_v56 = vadd.f32 %v1700_v61, %v1699_v51  ;;  %v2855_v7 = vpop.f32.mrf.mxu0  ;;  %2932 = vmatmul.mubr.msk.f32.gmra.mxu0 %vm4788_vm11, %v3684_v60  ;;  %vm4794_vm2 = vmmov %vm4729_vm0 }
 0x1d6   :  { %v1702_v3 = vsel %vm4789_vm9, %v1055_v54, 0.0  ;;  %v1058_v28 = vadd.f32 %v2855_v7, %v3870_v20  ;;  %vm4795_vm12 = vmmov %vm4784_vm3 }
 0x1d7   :  { %v1703_v36 = vadd.f32 %v1702_v3, %v1701_v56  ;;  %v1034_v13 = vpop.f32.mrf.mxu0  ;;  %2901 = vmatmul.mubr.msk.f32.gmra.mxu1 %vm4790_vm15, %v3669_v4  ;;  %vm4796_vm14 = vmmov %vm4729_vm0 }
 0x1d8   :  { %v1057_v25 = vadd.f32 %v1034_v13, %v3872_v19  ;;  %2903 = vmatprep.mubr.msk.f32.mxu1 %vm4792_vm13, %v3676_v57  ;;  %v1708_v47 = vsel %vm4795_vm12, %v1058_v28, 0.0  ;;  %vm4797_vm1 = vmmov %vm4729_vm0  ;;  %v4800_v19 = vld [vmem:[#allocation8_spill] sm:$0xff] }
 0x1d9   :  { %v1705_v53 = vadd.f32 %v1704_v59, %v1703_v36  ;;  %vm4798_vm5 = vmmov %vm4729_vm0 }
 0x1da   :  { %v1706_v9 = vsel %vm4793_vm8, %v1057_v25, 0.0  ;;  %vm4799_vm3 = vmmov %vm4729_vm0 }
 0x1db   :  { %v1707_v60 = vadd.f32 %v1706_v9, %v1705_v53  ;;  %2904 = vmatmul.mubr.msk.f32.gmra.mxu1 %vm4794_vm2, %v3689_v5  ;;  %vm4801_vm7 = vmmov %vm4729_vm0 }
 0x1dc   :  { %2938 = vmatprep.mubr.msk.f32.mxu1 %vm4796_vm14, %v3726_v35  ;;  %v4803_v35 = vld [vmem:[#allocation10_spill] sm:$0xff]  ;;  %vm4804_vm6 = vmmov %vm4729_vm0 }
 0x1dd   :  { %v1709_v4 = vadd.f32 %v1708_v47, %v1707_v60  ;;  %vm4806_vm4 = vmmov %vm4729_vm0 }
 0x1de   :  { %vm4808_vm11 = vmmov %vm4729_vm0 }
 0x1df   :  { %v1710_v27 = vrot.slane %v1709_v4, 4  ;;  %2939 = vmatmul.mubr.msk.f32.vlgmr.msra.gmra.mxu1 %vm4797_vm1, %v3734_v8  ;;  %vm4810_vm9 = vmmov %vm4729_vm0 }
 0x1e0   :  { %2941 = vmatprep.mubr.msk.f32.mxu1 %vm4798_vm5, %v3739_v11  ;;  %v4807_v11 = vld [vmem:[#allocation12_spill] sm:$0xff]  ;;  %vm4812_vm15 = vmmov %vm4729_vm0 }
 0x1e1   :  { %v1711_v57 = vadd.f32 %v1710_v27, %v1709_v4  ;;  %vm4814_vm10 = vmmov %vm4729_vm0 }
 0x1e2   :  { %vm4816_vm13 = vmmov %vm4729_vm0 }
 0x1e3   :  { %v1712_v20 = vrot.slane %v1711_v57, 2  ;;  %2942 = vmatmul.mubr.msk.f32.gmra.mxu1 %vm4799_vm3, %v3752_v12  ;;  %vm4817_vm2 = vmmov %vm4793_vm8 }
 0x1e4   :  { %2944 = vmatprep.mubr.msk.f32.mxu1 %vm4801_vm7, %v4800_v19  ;;  %vm4818_vm12 = vmmov %vm4817_vm2 }
 0x1e5   :  { %v1713_v5 = vadd.f32 %v1712_v20, %v1711_v57  ;;  %vm4820_vm14 = vmmov %vm4729_vm0 }
 0x1e6   :  { %vm4822_vm1 = vmmov %vm4729_vm0 }
 0x1e7   :  { %v1714_v10 = vrot.slane %v1713_v5, 1  ;;  %2945 = vmatmul.mubr.msk.f32.gmra.mxu1 %vm4729_vm0, %v4802_v16  ;;  %vm4823_vm5 = vmmov %vm4817_vm2 }
 0x1e8   :  { %2947 = vmatprep.mubr.msk.f32.mxu1 %vm4804_vm6, %v4803_v35  ;;  %vm4824_vm3 = vmmov %vm4817_vm2 }
 0x1e9   :  { %v1715_v8 = vadd.f32 %v1714_v10, %v1713_v5  ;;  %vm4826_vm7 = vmmov %vm4729_vm0 }
 0x1ea   :  { %vm4827_vm0 = vmmov %vm4817_vm2 }
 0x1eb   :  { %v1717_v46 = vmul.f32 0.0078125, %v1715_v8  ;;  %2948 = vmatmul.mubr.msk.f32.gmra.mxu1 %vm4806_vm4, %v4805_v23  ;;  %vm4828_vm6 = vmmov %vm4827_vm0 }
 0x1ec   :  { %2950 = vmatprep.mubr.msk.f32.mxu1 %vm4808_vm11, %v4807_v11  ;;  %vm4829_vm4 = vmmov %vm4827_vm0 }
 0x1ed   :  { %v4019_v12 = vsub.f32 %v3882_v33, %v1717_v46  ;;  %v4022_v18 = vsub.f32 %v3876_v15, %v1717_v46  ;;  %v4025_v32 = vsub.f32 %v3902_v21, %v1717_v46  ;;  %v4028_v24 = vsub.f32 %v3899_v1, %v1717_v46  ;;  %vm4830_vm11 = vmmov %vm4827_vm0 }
 0x1ee   :  { %v4031_v6 = vsub.f32 %v3920_v30, %v1717_v46  ;;  %v4034_v63 = vsub.f32 %v3917_v58, %v1717_v46  ;;  %v4037_v62 = vsub.f32 %v3938_v17, %v1717_v46  ;;  %v4040_v33 = vsub.f32 %v3935_v26, %v1717_v46  ;;  %v4809_v30 = vld [vmem:[#allocation13_spill] sm:$0xff] }
 0x1ef   :  { %v4043_v15 = vsub.f32 %v3956_v41, %v1717_v46  ;;  %v4046_v21 = vsub.f32 %v3953_v38, %v1717_v46  ;;  %v4048_v1 = vsub.f32 %v1053_v14, %v1717_v46  ;;  %v4050_v39 = vsub.f32 %v1054_v45, %v1717_v46  ;;  %2951 = vmatmul.mubr.msk.f32.gmra.mxu1 %vm4810_vm9, %v4809_v30  ;;  %v4813_v38 = vld [vmem:[#allocation15_spill] sm:$0xff]  ;;  %v4815_v41 = vld [vmem:[#allocation16_spill] sm:$0xff]  ;;  %v4819_v45 = vld [vmem:[#allocation17_spill] sm:$0xff] }
 0x1f0   :  { %v4054_v58 = vsub.f32 %v1055_v54, %v1717_v46  ;;  %v4056_v17 = vsub.f32 %v1056_v0, %v1717_v46  ;;  %v4058_v31 = vsub.f32 %v1057_v25, %v1717_v46  ;;  %v4060_v26 = vsub.f32 %v1058_v28, %v1717_v46  ;;  %2953 = vmatprep.mubr.msk.f32.mxu1 %vm4812_vm15, %v4811_v34  ;;  %v4825_v0 = vld [vmem:[#allocation19_spill] sm:$0xff]  ;;  %vm4831_vm9 = vmmov %vm4827_vm0 }
 0x1f1   :  { %v1734_v42 = vmul.f32 %v4019_v12, %v4019_v12  ;;  %v1735_v29 = vmul.f32 %v4022_v18, %v4022_v18  ;;  %v1736_v40 = vmul.f32 %v4025_v32, %v4025_v32  ;;  %v1737_v48 = vmul.f32 %v4028_v24, %v4028_v24  ;;  %vm4832_vm15 = vmmov %vm4827_vm0 }
 0x1f2   :  { %v1738_v44 = vmul.f32 %v4031_v6, %v4031_v6  ;;  %v1739_v22 = vmul.f32 %v4034_v63, %v4034_v63  ;;  %v1740_v37 = vmul.f32 %v4037_v62, %v4037_v62  ;;  %v1741_v56 = vmul.f32 %v4040_v33, %v4040_v33 }
 0x1f3   :  { %2954 = vmatmul.mubr.msk.f32.gmra.mxu1 %vm4814_vm10, %v4813_v38  ;;  %v1750_v2 = vsel %vm4793_vm8, %v1734_v42, 0.0  ;;  %v1751_v43 = vsel %vm4817_vm2, %v1735_v29, 0.0  ;;  %v1753_v49 = vsel %vm4818_vm12, %v1736_v40, 0.0  ;;  %v1755_v55 = vsel %vm4823_vm5, %v1737_v48, 0.0  ;;  %vm4833_vm10 = vmmov %vm4827_vm0 }
 0x1f4   :  { %2956 = vmatprep.mubr.msk.f32.mxu1 %vm4816_vm13, %v4815_v41  ;;  %v1752_v50 = vadd.f32 %v1751_v43, %v1750_v2  ;;  %v1757_v61 = vsel %vm4824_vm3, %v1738_v44, 0.0  ;;  %v1759_v7 = vsel %vm4827_vm0, %v1739_v22, 0.0  ;;  %v1742_v36 = vmul.f32 %v4043_v15, %v4043_v15  ;;  %vm4834_vm13 = vmmov %vm4827_vm0 }
 0x1f5   :  { %v1761_v13 = vsel %vm4828_vm6, %v1740_v37, 0.0  ;;  %v1743_v28 = vmul.f32 %v4046_v21, %v4046_v21  ;;  %v1763_v25 = vsel %vm4829_vm4, %v1741_v56, 0.0  ;;  %v1744_v9 = vmul.f32 %v4048_v1, %v4048_v1  ;;  %vm4835_vm8 = vmmov %vm4827_vm0 }
 0x1f6   :  { %v1754_v14 = vadd.f32 %v1753_v49, %v1752_v50  ;;  %v1765_v60 = vsel %vm4830_vm11, %v1742_v36, 0.0  ;;  %v1745_v4 = vmul.f32 %v4050_v39, %v4050_v39  ;;  %v1746_v20 = vmul.f32 %v4054_v58, %v4054_v58  ;;  %vm4836_vm2 = vmmov %vm4827_vm0 }
 0x1f7   :  { %2957 = vmatmul.mubr.msk.f32.gmra.mxu1 %vm4820_vm14, %v4819_v45  ;;  %v1767_v27 = vsel %vm4831_vm9, %v1743_v28, 0.0  ;;  %v1769_v19 = vsel %vm4832_vm15, %v1744_v9, 0.0  ;;  %v1747_v10 = vmul.f32 %v4056_v17, %v4056_v17  ;;  %v1748_v8 = vmul.f32 %v4058_v31, %v4058_v31  ;;  %vm4837_vm12 = vmmov %vm4827_vm0 }
 0x1f8   :  { %2959 = vmatprep.mubr.msk.f32.mxu1 %vm4822_vm1, %v4821_v52  ;;  %v1756_v51 = vadd.f32 %v1755_v55, %v1754_v14  ;;  %v1771_v16 = vsel %vm4833_vm10, %v1745_v4, 0.0  ;;  %v1773_v46 = vsel %vm4834_vm13, %v1746_v20, 0.0  ;;  %v1749_v11 = vmul.f32 %v4060_v26, %v4060_v26  ;;  %vm4838_vm14 = vmmov %vm4827_vm0 }
 0x1f9   :  { %v1775_v30 = vsel %vm4835_vm8, %v1747_v10, 0.0  ;;  %v1777_v42 = vsel %vm4836_vm2, %v1748_v8, 0.0  ;;  %vm4839_vm1 = vmmov %vm4827_vm0 }
 0x1fa   :  { %v1758_v54 = vadd.f32 %v1757_v61, %v1756_v51  ;;  %v1779_v40 = vsel %vm4837_vm12, %v1749_v11, 0.0  ;;  %vm4840_vm5 = vmmov %vm4827_vm0 }
 0x1fb   :  { %2960 = vmatmul.mubr.msk.f32.gmra.mxu1 %vm4826_vm7, %v4825_v0  ;;  %vm4841_vm3 = vmmov %vm4827_vm0 }
 0x1fc   :  { %v1760_v3 = vadd.f32 %v1759_v7, %v1758_v54  ;;  %vm4842_vm7 = vmmov %vm4827_vm0 }
 0x1fd   :  { %vm4843_vm6 = vmmov %vm4827_vm0 }
 0x1fe   :  { %v1762_v59 = vadd.f32 %v1761_v13, %v1760_v3  ;;  %vm4844_vm4 = vmmov %vm4827_vm0 }
 0x1ff   :  { %vm4845_vm11 = vmmov %vm4827_vm0 }
 0x200   :  { %v1764_v53 = vadd.f32 %v1763_v25, %v1762_v59  ;;  %vm4846_vm9 = vmmov %vm4827_vm0 }
 0x201   :  { %vm4847_vm15 = vmmov %vm4827_vm0 }
 0x202   :  { %v1766_v47 = vadd.f32 %v1765_v60, %v1764_v53  ;;  %vm4848_vm10 = vmmov %vm4827_vm0 }
 0x203   :  { %vm4849_vm13 = vmmov %vm4827_vm0 }
 0x204   :  { %v1768_v57 = vadd.f32 %v1767_v27, %v1766_v47  ;;  %vm4850_vm8 = vmmov %vm4827_vm0 }
 0x205   :  { %vm4851_vm2 = vmmov %vm4827_vm0 }
 0x206   :  { %v1770_v5 = vadd.f32 %v1769_v19, %v1768_v57  ;;  %vm4852_vm12 = vmmov %vm4827_vm0 }
 0x208   :  { %v1772_v35 = vadd.f32 %v1771_v16, %v1770_v5 }
 0x20a   :  { %v1774_v23 = vadd.f32 %v1773_v46, %v1772_v35 }
 0x20c   :  { %v1776_v34 = vadd.f32 %v1775_v30, %v1774_v23 }
 0x20e   :  { %v1778_v29 = vadd.f32 %v1777_v42, %v1776_v34 }
 0x210   :  { %v1780_v38 = vadd.f32 %v1779_v40, %v1778_v29 }
 0x212   :  { %v1781_v41 = vrot.slane %v1780_v38, 4 }
 0x214   :  { %v1782_v48 = vadd.f32 %v1781_v41, %v1780_v38 }
 0x216   :  { %v1783_v2 = vrot.slane %v1782_v48, 2 }
 0x218   :  { %v1784_v43 = vadd.f32 %v1783_v2, %v1782_v48 }
 0x21a   :  { %v1785_v50 = vrot.slane %v1784_v43, 1 }
 0x21c   :  { %v1786_v44 = vadd.f32 %v1785_v50, %v1784_v43 }
 0x21e   :  { %v1787_v49 = vmul.f32 0.0078125, %v1786_v44 }
 0x220   :  { %v1788_v45 = vadd.f32 1e-05, %v1787_v49 }
 0x222   :  { %3009 = vrsqrt.f32 %v1788_v45 }
 0x22f   :  { %v4122_v14 = vpop.eup %3009 }
 0x230   :  { %v4126_v52 = vmul.f32 %v4122_v14, %v4043_v15  ;;  %v4130_v22 = vmul.f32 %v4122_v14, %v4046_v21  ;;  %v4134_v55 = vmul.f32 %v4122_v14, %v4048_v1  ;;  %v4138_v51 = vmul.f32 %v4122_v14, %v4050_v39 }
 0x231   :  { %v4142_v37 = vmul.f32 %v4122_v14, %v4054_v58  ;;  %v4146_v15 = vmul.f32 %v4122_v14, %v4056_v17  ;;  %v4150_v21 = vmul.f32 %v4122_v14, %v4058_v31  ;;  %v4154_v1 = vmul.f32 %v4122_v14, %v4060_v26 }
 0x279   :  { %v2912_v61 = vpop.f32.mrf.mxu0 }
 0x27b   :  { %v1437_v54 = vpop.f32.mrf.mxu0 }
 0x27d   :  { %v2915_v7 = vpop.f32.mrf.mxu0 }
 0x27f   :  { %v2884_v0 = vpop.f32.mrf.mxu1  ;;  %v1447_v36 = vpop.f32.mrf.mxu0 }
 0x280   :  { %v1443_v10 = vadd.f32 %v2912_v61, %v2884_v0 }
 0x281   :  { %v1292_v39 = vpop.f32.mrf.mxu1  ;;  %v2918_v59 = vpop.f32.mrf.mxu0 }
 0x282   :  { %v1438_v16 = vadd.f32 %v1437_v54, %v1292_v39 }
 0x283   :  { %v2887_v56 = vpop.f32.mrf.mxu1  ;;  %v1457_v31 = vpop.f32.mrf.mxu0 }
 0x284   :  { %v1453_v30 = vadd.f32 %v2915_v7, %v2887_v56 }
 0x285   :  { %v1302_v58 = vpop.f32.mrf.mxu1  ;;  %v2921_v60 = vpop.f32.mrf.mxu0 }
 0x286   :  { %v1448_v34 = vadd.f32 %v1447_v36, %v1302_v58 }
 0x287   :  { %v2890_v3 = vpop.f32.mrf.mxu1  ;;  %v1467_v4 = vpop.f32.mrf.mxu0 }
 0x288   :  { %v1463_v50 = vadd.f32 %v2918_v59, %v2890_v3 }
 0x289   :  { %v1312_v13 = vpop.f32.mrf.mxu1  ;;  %v2924_v20 = vpop.f32.mrf.mxu0 }
 0x28a   :  { %v1458_v44 = vadd.f32 %v1457_v31, %v1312_v13 }
 0x28b   :  { %v2893_v17 = vpop.f32.mrf.mxu1  ;;  %v1477_v35 = vpop.f32.mrf.mxu0 }
 0x28c   :  { %v1473_v36 = vadd.f32 %v2921_v60, %v2893_v17 }
 0x28d   :  { %v1322_v28 = vpop.f32.mrf.mxu1  ;;  %v2927_v29 = vpop.f32.mrf.mxu0 }
 0x28f   :  { %v2896_v25 = vpop.f32.mrf.mxu1  ;;  %v1487_v45 = vpop.f32.mrf.mxu0 }
 0x291   :  { %v1332_v53 = vpop.f32.mrf.mxu1  ;;  %v2930_v13 = vpop.f32.mrf.mxu0 }
 0x293   :  { %v2899_v9 = vpop.f32.mrf.mxu1 }
 0x295   :  { %v1342_v26 = vpop.f32.mrf.mxu1 }
 0x297   :  { %v4156_v47 = vpop.f32.mrf.mxu1 }
 0x299   :  { %v4158_v27 = vpop.f32.mrf.mxu1 }
 0x29b   :  { %v4160_v57 = vpop.f32.mrf.mxu1 }
 0x29d   :  { %v4162_v19 = vpop.f32.mrf.mxu1 }
 0x29f   :  { %v2940_v5 = vpop.f32.mrf.mxu1 }
 0x2a0   :  { %v4164_v46 = vadd.f32 %v2940_v5, %v1443_v10  ;;  %v1468_v5 = vadd.f32 %v1467_v4, %v1322_v28  ;;  %v1497_v28 = vpop.f32.mrf.mxu0 }
 0x2a1   :  { %v1582_v8 = vpop.f32.mrf.mxu1 }
 0x2a2   :  { %v4166_v23 = vadd.f32 %v1582_v8, %v1438_v16  ;;  %v1949_v38 = vsel %vm4839_vm1, %v4164_v46, 0.0  ;;  %vm4854_vm1 = vmmov %vm4827_vm0 }
 0x2a3   :  { %v2943_v11 = vpop.f32.mrf.mxu1 }
 0x2a4   :  { %v1948_v42 = vsel %vm4838_vm14, %v4166_v23, 0.0  ;;  %v4172_v41 = vadd.f32 %v2943_v11, %v1453_v30  ;;  %vm4853_vm14 = vmmov %vm4827_vm0 }
 0x2a5   :  { %v1592_v40 = vpop.f32.mrf.mxu1  ;;  %v1950_v2 = vadd.f32 %v1949_v38, %v1948_v42  ;;  %v1478_v42 = vadd.f32 %v1477_v35, %v1332_v53  ;;  %v2933_v53 = vpop.f32.mrf.mxu0 }
 0x2a6   :  { %v4174_v48 = vadd.f32 %v1592_v40, %v1448_v34  ;;  %v1953_v39 = vsel %vm4841_vm3, %v4172_v41, 0.0  ;;  %v1483_v34 = vadd.f32 %v2924_v20, %v2896_v25  ;;  %vm4856_vm3 = vmmov %vm4827_vm0 }
 0x2a7   :  { %v2946_v43 = vpop.f32.mrf.mxu1 }
 0x2a8   :  { %v1951_v49 = vsel %vm4840_vm5, %v4174_v48, 0.0  ;;  %v4180_v54 = vadd.f32 %v2946_v43, %v1463_v50  ;;  %vm4855_vm5 = vmmov %vm4827_vm0 }
 0x2a9   :  { %v1952_v61 = vadd.f32 %v1951_v49, %v1950_v2  ;;  %v1602_v0 = vpop.f32.mrf.mxu1  ;;  %v1488_v49 = vadd.f32 %v1487_v45, %v1342_v26  ;;  %v1507_v26 = vpop.f32.mrf.mxu0 }
 0x2aa   :  { %v4182_v56 = vadd.f32 %v1602_v0, %v1458_v44  ;;  %v1957_v10 = vsel %vm4827_vm0, %v4180_v54, 0.0  ;;  %v1493_v44 = vadd.f32 %v2927_v29, %v2899_v9 }
 0x2ab   :  { %v1954_v7 = vadd.f32 %v1953_v39, %v1952_v61  ;;  %v2949_v58 = vpop.f32.mrf.mxu1 }
 0x2ac   :  { %v1955_v3 = vsel %vm4842_vm7, %v4182_v56, 0.0  ;;  %v4188_v16 = vadd.f32 %v2949_v58, %v1473_v36  ;;  %v1503_v36 = vadd.f32 %v2930_v13, %v4156_v47  ;;  %v1508_v47 = vadd.f32 %v1507_v26, %v4162_v19  ;;  %vm4857_vm7 = vmmov %vm4827_vm0 }
 0x2ad   :  { %v1956_v59 = vadd.f32 %v1955_v3, %v1954_v7  ;;  %v1612_v31 = vpop.f32.mrf.mxu1 }
 0x2ae   :  { %v4190_v8 = vadd.f32 %v1612_v31, %v1468_v5  ;;  %v1961_v40 = vsel %vm4844_vm4, %v4188_v16, 0.0  ;;  %v1498_v5 = vadd.f32 %v1497_v28, %v4158_v27  ;;  %vm4860_vm4 = vmmov %vm4827_vm0 }
 0x2af   :  { %v1958_v11 = vadd.f32 %v1957_v10, %v1956_v59  ;;  %v2952_v30 = vpop.f32.mrf.mxu1 }
 0x2b0   :  { %v1959_v17 = vsel %vm4843_vm6, %v4190_v8, 0.0  ;;  %v4196_v38 = vadd.f32 %v2952_v30, %v1483_v34  ;;  %v1513_v30 = vadd.f32 %v2933_v53, %v4160_v57  ;;  %vm4858_vm6 = vmmov %vm4827_vm0 }
 0x2b1   :  { %v1960_v60 = vadd.f32 %v1959_v17, %v1958_v11  ;;  %v1622_v4 = vpop.f32.mrf.mxu1 }
 0x2b2   :  { %v4198_v2 = vadd.f32 %v1622_v4, %v1478_v42  ;;  %v1965_v61 = vsel %vm4846_vm9, %v4196_v38, 0.0  ;;  %vm4862_vm9 = vmmov %vm4827_vm0 }
 0x2b3   :  { %v1962_v43 = vadd.f32 %v1961_v40, %v1960_v60  ;;  %v2955_v50 = vpop.f32.mrf.mxu1 }
 0x2b4   :  { %v1963_v25 = vsel %vm4845_vm11, %v4198_v2, 0.0  ;;  %v4204_v0 = vadd.f32 %v2955_v50, %v1493_v44 }
 0x2b5   :  { %v1964_v20 = vadd.f32 %v1963_v25, %v1962_v43  ;;  %v1632_v35 = vpop.f32.mrf.mxu1 }
 0x2b6   :  { %v1671_v39 = vadd.f32 %v1632_v35, %v1488_v49  ;;  %v1969_v3 = vsel %vm4848_vm10, %v4204_v0, 0.0 }
 0x2b7   :  { %v1966_v7 = vadd.f32 %v1965_v61, %v1964_v20  ;;  %v2958_v58 = vpop.f32.mrf.mxu1 }
 0x2b8   :  { %v1967_v9 = vsel %vm4847_vm15, %v1671_v39, 0.0  ;;  %v4211_v59 = vadd.f32 %v2958_v58, %v1503_v36 }
 0x2b9   :  { %v1968_v29 = vadd.f32 %v1967_v9, %v1966_v7  ;;  %v1642_v45 = vpop.f32.mrf.mxu1 }
 0x2ba   :  { %v4213_v31 = vadd.f32 %v1642_v45, %v1498_v5  ;;  %v1973_v42 = vsel %vm4850_vm8, %v4211_v59, 0.0  ;;  %vm4864_vm8 = vmmov %vm4827_vm0 }
 0x2bb   :  { %v1970_v10 = vadd.f32 %v1969_v3, %v1968_v29  ;;  %v2961_v11 = vpop.f32.mrf.mxu1 }
 0x2bc   :  { %v1971_v27 = vsel %vm4849_vm13, %v4213_v31, 0.0  ;;  %v4221_v17 = vadd.f32 %v2961_v11, %v1513_v30  ;;  %vm4863_vm13 = vmmov %vm4827_vm0 }
 0x2bd   :  { %v1972_v13 = vadd.f32 %v1971_v27, %v1970_v10  ;;  %v1652_v34 = vpop.f32.mrf.mxu1 }
 0x2be   :  { %v4223_v28 = vadd.f32 %v1652_v34, %v1508_v47  ;;  %v1977_v57 = vsel %vm4852_vm12, %v4221_v17, 0.0  ;;  %vm4866_vm12 = vmmov %vm4827_vm0 }
 0x2bf   :  { %v1974_v60 = vadd.f32 %v1973_v42, %v1972_v13 }
 0x2c0   :  { %v1975_v4 = vsel %vm4851_vm2, %v4223_v28, 0.0  ;;  %vm4865_vm2 = vmmov %vm4827_vm0 }
 0x2c1   :  { %v1976_v40 = vadd.f32 %v1975_v4, %v1974_v60 }
 0x2c3   :  { %v1978_v19 = vadd.f32 %v1977_v57, %v1976_v40 }
 0x2c5   :  { %v1979_v43 = vrot.slane %v1978_v19, 4 }
 0x2c7   :  { %v1980_v50 = vadd.f32 %v1979_v43, %v1978_v19  ;;  %v4859_v19 = vld [vmem:[#allocation6_spill] sm:$0xff] }
 0x2c8   :  { %v2262_v43 = vmul.u32 8, %v4859_v19 }
 0x2c9   :  { %v1981_v44 = vrot.slane %v1980_v50, 2 }
 0x2cb   :  { %v1982_v49 = vadd.f32 %v1981_v44, %v1980_v50  ;;  %v2266_v50 = vadd.s32 1, %v4859_v19 }
 0x2cd   :  { %v1983_v25 = vrot.slane %v1982_v49, 1 }
 0x2cf   :  { %v1984_v53 = vadd.f32 %v1983_v25, %v1982_v49  ;;  %v4861_v25 = vld [vmem:[#allocation5_spill] sm:$0xff] }
 0x2d0   :  { %vm2264_vm11 = vcmp.ge.s32.totalorder %v4861_v25, %v2262_v43 }
 0x2d1   :  { %v1985_v20 = vmul.f32 0.0078125, %v1984_v53  ;;  %v2268_v53 = vmul.u32 8, %v2266_v50 }
 0x2d3   :  { %v4230_v35 = vsub.f32 %v4166_v23, %v1985_v20  ;;  %v4233_v61 = vsub.f32 %v4164_v46, %v1985_v20  ;;  %v4236_v7 = vsub.f32 %v4174_v48, %v1985_v20  ;;  %v4239_v58 = vsub.f32 %v4172_v41, %v1985_v20 }
 0x2d4   :  { %v4246_v9 = vsub.f32 %v4182_v56, %v1985_v20  ;;  %v4251_v46 = vsub.f32 %v4180_v54, %v1985_v20  ;;  %v4258_v45 = vsub.f32 %v4190_v8, %v1985_v20  ;;  %v4264_v54 = vsub.f32 %v4188_v16, %v1985_v20 }
 0x2d5   :  { %v2002_v36 = vmul.f32 %v4230_v35, %v4230_v35  ;;  %v2003_v5 = vmul.f32 %v4233_v61, %v4233_v61  ;;  %v2004_v23 = vmul.f32 %v4236_v7, %v4236_v7  ;;  %v2005_v48 = vmul.f32 %v4239_v58, %v4239_v58 }
 0x2d6   :  { %v2006_v56 = vmul.f32 %v4246_v9, %v4246_v9  ;;  %v2007_v11 = vmul.f32 %v4251_v46, %v4251_v46  ;;  %v4270_v27 = vsub.f32 %v4198_v2, %v1985_v20  ;;  %v2008_v8 = vmul.f32 %v4258_v45, %v4258_v45 }
 0x2d7   :  { %v2018_v41 = vsel %vm4853_vm14, %v2002_v36, 0.0  ;;  %v2019_v26 = vsel %vm4854_vm1, %v2003_v5, 0.0  ;;  %v2021_v3 = vsel %vm4855_vm5, %v2004_v23, 0.0  ;;  %v2023_v30 = vsel %vm4856_vm3, %v2005_v48, 0.0  ;;  %vm4867_vm14 = vmmov %vm4827_vm0 }
 0x2d8   :  { %v2020_v29 = vadd.f32 %v2019_v26, %v2018_v41  ;;  %v2025_v13 = vsel %vm4857_vm7, %v2006_v56, 0.0  ;;  %v4276_v42 = vsub.f32 %v4196_v38, %v1985_v20  ;;  %v2009_v16 = vmul.f32 %v4264_v54, %v4264_v54  ;;  %vm4868_vm1 = vmmov %vm4827_vm0 }
 0x2d9   :  { %v2027_v60 = vsel %vm4827_vm0, %v2007_v11, 0.0  ;;  %v4281_v4 = vsub.f32 %v1671_v39, %v1985_v20  ;;  %v2010_v2 = vmul.f32 %v4270_v27, %v4270_v27  ;;  %v2029_v57 = vsel %vm4858_vm6, %v2008_v8, 0.0  ;;  %vm4869_vm5 = vmmov %vm4827_vm0 }
 0x2da   :  { %v2022_v10 = vadd.f32 %v2021_v3, %v2020_v29  ;;  %v4289_v38 = vsub.f32 %v4204_v0, %v1985_v20  ;;  %v2011_v49 = vmul.f32 %v4276_v42, %v4276_v42  ;;  %v2031_v39 = vsel %vm4860_vm4, %v2009_v16, 0.0 }
 0x2db   :  { %v4296_v5 = vsub.f32 %v4213_v31, %v1985_v20  ;;  %v2012_v23 = vmul.f32 %v4281_v4, %v4281_v4  ;;  %v2033_v48 = vsel %vm4862_vm9, %v2010_v2, 0.0  ;;  %vm2270_vm15 = vcmp.lt.s32.totalorder %v4861_v25, %v2268_v53 }
 0x2dc   :  { %v2024_v47 = vadd.f32 %v2023_v30, %v2022_v10  ;;  %vm2272_vm10 = vmand %vm2264_vm11, %vm2270_vm15  ;;  %v4303_v41 = vsub.f32 %v4211_v59, %v1985_v20  ;;  %v2013_v26 = vmul.f32 %v4289_v38, %v4289_v38  ;;  %v2035_v29 = vsel %vm4863_vm13, %v2011_v49, 0.0 }
 0x2dd   :  { %v3177_v56 = vmov 1.0   ;;  %v4310_v3 = vsub.f32 %v4223_v28, %v1985_v20  ;;  %v2014_v10 = vmul.f32 %v4296_v5, %v4296_v5  ;;  %v2037_v11 = vsel %vm4864_vm8, %v2012_v23, 0.0 }
 0x2de   :  { %v2026_v34 = vadd.f32 %v2025_v13, %v2024_v47  ;;  %2994 = vmatprep.mubr.msk.f32.mxu0 %vm2272_vm10, %v3177_v56  ;;  %v4316_v59 = vsub.f32 %v4221_v17, %v1985_v20  ;;  %v2015_v47 = vmul.f32 %v4303_v41, %v4303_v41  ;;  %v2039_v8 = vsel %vm4865_vm2, %v2013_v26, 0.0  ;;  %v2574_v17 = vld [vmem:[%s4620_s11] ss:$0 sm:$0xff] }
 0x2df   :  { %v2041_v28 = vsel %vm4866_vm12, %v2014_v10, 0.0  ;;  %v1823_v43 = vmul.f32 %v2574_v17, %v4138_v51  ;;  %v1825_v49 = vmul.f32 %v2574_v17, %v4146_v15 }
 0x2e0   :  { %v2028_v40 = vadd.f32 %v2027_v60, %v2026_v34  ;;  %v2016_v34 = vmul.f32 %v4310_v3, %v4310_v3  ;;  %v2017_v60 = vmul.f32 %v4316_v59, %v4316_v59 }
 0x2e2   :  { %v2030_v44 = vadd.f32 %v2029_v57, %v2028_v40  ;;  %v2043_v40 = vsel %vm4867_vm14, %v2015_v47, 0.0  ;;  %v2045_v20 = vsel %vm4868_vm1, %v2016_v34, 0.0  ;;  %v2047_v19 = vsel %vm4869_vm5, %v2017_v60, 0.0 }
 0x2e3   :  { %v1796_v47 = vmul.f32 %v4122_v14, %v4037_v62  ;;  %v1820_v34 = vmul.f32 %v2574_v17, %v4126_v52  ;;  %v1793_v62 = vmul.f32 %v4122_v14, %v4028_v24  ;;  %v1790_v24 = vmul.f32 %v4122_v14, %v4019_v12 }
 0x2e4   :  { %v2032_v36 = vadd.f32 %v2031_v39, %v2030_v44  ;;  %v4336_v44 = vld [vmem:[%s4621_s12] ss:$0 sm:$0xff]  ;;  %v1826_v39 = vmul.f32 %v2574_v17, %v4150_v21  ;;  %v1797_v21 = vmul.f32 %v4122_v14, %v4040_v33  ;;  %v1794_v33 = vmul.f32 %v4122_v14, %v4031_v6 }
 0x2e5   :  { %v1842_v6 = vadd.f32 %v4336_v44, %v1820_v34 }
 0x2e6   :  { %v2034_v0 = vadd.f32 %v2033_v48, %v2032_v36  ;;  %v1827_v36 = vmul.f32 %v2574_v17, %v4154_v1  ;;  %v1845_v48 = vadd.f32 %v4336_v44, %v1823_v43  ;;  %v1848_v51 = vadd.f32 %v4336_v44, %v1826_v39 }
 0x2e7   :  { %v1815_v39 = vmul.f32 %v2574_v17, %v1793_v62 }
 0x2e8   :  { %v2036_v31 = vadd.f32 %v2035_v29, %v2034_v0  ;;  %v1847_v0 = vadd.f32 %v4336_v44, %v1825_v49  ;;  %v1822_v29 = vmul.f32 %v2574_v17, %v4134_v55  ;;  %v1849_v10 = vadd.f32 %v4336_v44, %v1827_v36 }
 0x2e9   :  { %v1795_v55 = vmul.f32 %v4122_v14, %v4034_v63  ;;  %v1792_v63 = vmul.f32 %v4122_v14, %v4025_v32 }
 0x2ea   :  { %v2038_v30 = vadd.f32 %v2037_v11, %v2036_v31  ;;  %v1824_v31 = vmul.f32 %v2574_v17, %v4142_v37  ;;  %v2587_v11 = vmul.f32 -1.442695, %v1845_v48  ;;  %v2589_v1 = vmul.f32 -1.442695, %v1847_v0 }
 0x2eb   :  { %v1814_v36 = vmul.f32 %v2574_v17, %v1792_v63  ;;  %v2584_v0 = vmul.f32 -1.442695, %v1842_v6 }
 0x2ec   :  { %v2040_v13 = vadd.f32 %v2039_v8, %v2038_v30  ;;  %v1821_v30 = vmul.f32 %v2574_v17, %v4130_v22  ;;  %v2590_v8 = vmul.f32 -1.442695, %v1848_v51  ;;  %v1846_v37 = vadd.f32 %v4336_v44, %v1824_v31 }
 0x2ed   :  { %3011 = vpow2.f32 %v2587_v11  ;;  %v1819_v22 = vmul.f32 %v2574_v17, %v1797_v21  ;;  %v1836_v31 = vadd.f32 %v4336_v44, %v1814_v36 }
 0x2ee   :  { %v2042_v16 = vadd.f32 %v2041_v28, %v2040_v13  ;;  %v2591_v28 = vmul.f32 -1.442695, %v1849_v10  ;;  %3013 = vpow2.f32 %v2589_v1  ;;  %v1843_v52 = vadd.f32 %v4336_v44, %v1821_v30 }
 0x2ef   :  { %3015 = vpow2.f32 %v2590_v8  ;;  %v1841_v49 = vadd.f32 %v4336_v44, %v1819_v22 }
 0x2f0   :  { %v2044_v2 = vadd.f32 %v2043_v40, %v2042_v16  ;;  %v1844_v16 = vadd.f32 %v4336_v44, %v1822_v29  ;;  %v1818_v40 = vmul.f32 %v2574_v17, %v1796_v47  ;;  %3017 = vpow2.f32 %v2591_v28 }
 0x2f1   :  { %v2583_v12 = vmul.f32 -1.442695, %v1841_v49 }
 0x2f2   :  { %v2046_v57 = vadd.f32 %v2045_v20, %v2044_v2  ;;  %v1817_v20 = vmul.f32 %v2574_v17, %v1795_v55  ;;  %v1840_v32 = vadd.f32 %v4336_v44, %v1818_v40 }
 0x2f4   :  { %v2048_v50 = vadd.f32 %v2047_v19, %v2046_v57  ;;  %v1791_v57 = vmul.f32 %v4122_v14, %v4022_v18  ;;  %v1816_v19 = vmul.f32 %v2574_v17, %v1794_v33  ;;  %v1839_v18 = vadd.f32 %v4336_v44, %v1817_v20 }
 0x2f5   :  { %v1837_v14 = vadd.f32 %v4336_v44, %v1815_v39  ;;  %v2582_v29 = vmul.f32 -1.442695, %v1840_v32 }
 0x2f6   :  { %v2049_v53 = vrot.slane %v2048_v50, 4  ;;  %v1813_v48 = vmul.f32 %v2574_v17, %v1791_v57  ;;  %v1838_v51 = vadd.f32 %v4336_v44, %v1816_v19  ;;  %v2581_v10 = vmul.f32 -1.442695, %v1839_v18 }
 0x2f7   :  { %v2579_v1 = vmul.f32 -1.442695, %v1837_v14 }
 0x2f8   :  { %v2050_v23 = vadd.f32 %v2049_v53, %v2048_v50  ;;  %v2588_v50 = vmul.f32 -1.442695, %v1846_v37  ;;  %v2586_v53 = vmul.f32 -1.442695, %v1844_v16  ;;  %v2580_v11 = vmul.f32 -1.442695, %v1838_v51 }
 0x2fa   :  { %v2051_v26 = vrot.slane %v2050_v23, 2  ;;  %v3012_v30 = vpop.eup %3011 }
 0x2fb   :  { %v3014_v47 = vpop.eup %3013  ;;  %v1909_v37 = vadd.f32 1.0, %v3012_v30 }
 0x2fc   :  { %v2052_v15 = vadd.f32 %v2051_v26, %v2050_v23  ;;  %v2585_v23 = vmul.f32 -1.442695, %v1843_v52  ;;  %v1812_v26 = vmul.f32 %v2574_v17, %v1790_v24  ;;  %v2578_v17 = vmul.f32 -1.442695, %v1836_v31 }
 0x2fe   :  { %v2053_v13 = vrot.slane %v2052_v15, 1  ;;  %v1834_v21 = vadd.f32 %v4336_v44, %v1812_v26 }
 0x300   :  { %v2054_v60 = vadd.f32 %v2053_v13, %v2052_v15  ;;  %v1835_v15 = vadd.f32 %v4336_v44, %v1813_v48  ;;  %v3016_v13 = vpop.eup %3015  ;;  %v2576_v34 = vmul.f32 -1.442695, %v1834_v21  ;;  %v4382_v44 = vld [vmem:[%s4622_s13] ss:$0 sm:$0xff] }
 0x301   :  { %v3018_v55 = vpop.eup %3017  ;;  %v1912_v16 = vadd.f32 1.0, %v3016_v13 }
 0x302   :  { %v2055_v2 = vmul.f32 0.0078125, %v2054_v60  ;;  %v2577_v8 = vmul.f32 -1.442695, %v1835_v15  ;;  %v1913_v33 = vadd.f32 1.0, %v3018_v55  ;;  %v1911_v60 = vadd.f32 1.0, %v3014_v47 }
 0x304   :  { %v2056_v43 = vadd.f32 1e-05, %v2055_v2  ;;  %v4395_v2 = vld [vmem:[%s4623_s14] ss:$0 sm:$0xff] }
 0x306   :  { %3019 = vrsqrt.f32 %v2056_v43 }
 0x307   :  { %3021 = vpow2.f32 %v2588_v50 }
 0x308   :  { %3023 = vpow2.f32 %v2586_v53 }
 0x309   :  { %3025 = vpow2.f32 %v2585_v23 }
 0x30a   :  { %3027 = vpow2.f32 %v2584_v0 }
 0x30b   :  { %3029 = vpow2.f32 %v2583_v12 }
 0x30c   :  { %3031 = vpow2.f32 %v2582_v29 }
 0x30d   :  { %3033 = vpow2.f32 %v2581_v10 }
 0x30e   :  { %3035 = vpow2.f32 %v2580_v11 }
 0x30f   :  { %3037 = vpow2.f32 %v2579_v1 }
 0x310   :  { %3039 = vpow2.f32 %v2578_v17 }
 0x311   :  { %3041 = vpow2.f32 %v2577_v8 }
 0x312   :  { %3043 = vpow2.f32 %v2576_v34 }
 0x313   :  { %v4377_v28 = vpop.eup %3019  ;;  %3045 = vrcp.f32 %v1909_v37 }
 0x314   :  { %v2072_v22 = vmul.f32 %v4377_v28, %v4310_v3  ;;  %v2073_v62 = vmul.f32 %v4377_v28, %v4316_v59  ;;  %v2071_v52 = vmul.f32 %v4377_v28, %v4303_v41  ;;  %v2070_v40 = vmul.f32 %v4377_v28, %v4296_v5  ;;  %v3022_v63 = vpop.eup %3021 }
 0x315   :  { %v2069_v20 = vmul.f32 %v4377_v28, %v4289_v38  ;;  %v2068_v3 = vmul.f32 %v4377_v28, %v4281_v4  ;;  %v2067_v59 = vmul.f32 %v4377_v28, %v4276_v42  ;;  %v2066_v41 = vmul.f32 %v4377_v28, %v4270_v27  ;;  %v3024_v57 = vpop.eup %3023 }
 0x316   :  { %v2094_v5 = vmul.f32 %v4382_v44, %v2072_v22  ;;  %v2095_v6 = vmul.f32 %v4382_v44, %v2073_v62  ;;  %v2093_v19 = vmul.f32 %v4382_v44, %v2071_v52  ;;  %v2092_v24 = vmul.f32 %v4382_v44, %v2070_v40  ;;  %v3026_v43 = vpop.eup %3025 }
 0x317   :  { %v2091_v38 = vmul.f32 %v4382_v44, %v2069_v20  ;;  %v2090_v4 = vmul.f32 %v4382_v44, %v2068_v3  ;;  %v2089_v50 = vmul.f32 %v4382_v44, %v2067_v59  ;;  %v2088_v42 = vmul.f32 %v4382_v44, %v2066_v41  ;;  %v3028_v49 = vpop.eup %3027 }
 0x318   :  { %v4414_v27 = vadd.f32 %v4395_v2, %v2094_v5  ;;  %v4417_v39 = vadd.f32 %v4395_v2, %v2095_v6  ;;  %v4420_v53 = vadd.f32 %v4395_v2, %v2093_v19  ;;  %v4423_v32 = vadd.f32 %v4395_v2, %v2092_v24  ;;  %v4425_v36 = vpop.eup %3029 }
 0x319   :  { %v1910_v23 = vadd.f32 1.0, %v3022_v63  ;;  %v4428_v18 = vadd.f32 %v4395_v2, %v2091_v38  ;;  %v4431_v48 = vadd.f32 %v4395_v2, %v2090_v4  ;;  %v4433_v0 = vpop.eup %3031  ;;  %3047 = vrcp.f32 %v1911_v60 }
 0x31a   :  { %v2148_v51 = vmin.f32 %v4414_v27, 20.0  ;;  %v2149_v26 = vmin.f32 %v4417_v39, 20.0  ;;  %v4438_v12 = vadd.f32 %v4395_v2, %v2089_v50  ;;  %v4440_v14 = vpop.eup %3033  ;;  %3049 = vrcp.f32 %v1912_v16 }
 0x31b   :  { %v2147_v29 = vmin.f32 %v4420_v53, 20.0  ;;  %v2146_v31 = vmin.f32 %v4423_v32, 20.0  ;;  %v4445_v10 = vadd.f32 %v4395_v2, %v2088_v42  ;;  %v4447_v15 = vpop.eup %3035  ;;  %3051 = vrcp.f32 %v1913_v33 }
 0x31c   :  { %v2178_v11 = vmul.f32 1.442695, %v2148_v51  ;;  %v2180_v21 = vmul.f32 1.442695, %v2149_v26  ;;  %v2145_v1 = vmin.f32 %v4428_v18, 20.0  ;;  %v4450_v30 = vpop.eup %3037  ;;  %3053 = vrcp.f32 %v1910_v23 }
 0x31d   :  { %v2176_v17 = vmul.f32 1.442695, %v2147_v29  ;;  %v2174_v47 = vmul.f32 1.442695, %v2146_v31  ;;  %v2144_v8 = vmin.f32 %v4431_v48, 20.0  ;;  %v4453_v13 = vpop.eup %3039  ;;  %v1908_v55 = vadd.f32 1.0, %v3024_v57 }
 0x31e   :  { %3055 = vpow2.f32 %v2178_v11  ;;  %v2172_v34 = vmul.f32 1.442695, %v2145_v1  ;;  %v2143_v37 = vmin.f32 %v4438_v12, 20.0  ;;  %v4456_v16 = vpop.eup %3041  ;;  %v1907_v60 = vadd.f32 1.0, %v3026_v43 }
 0x31f   :  { %3057 = vpow2.f32 %v2180_v21  ;;  %v2170_v33 = vmul.f32 1.442695, %v2144_v8  ;;  %v2142_v22 = vmin.f32 %v4445_v10, 20.0  ;;  %v4459_v62 = vpop.eup %3043  ;;  %v2065_v40 = vmul.f32 %v4377_v28, %v4264_v54 }
 0x320   :  { %3059 = vpow2.f32 %v2176_v17  ;;  %v2168_v52 = vmul.f32 1.442695, %v2143_v37  ;;  %v2064_v63 = vmul.f32 %v4377_v28, %v4258_v45  ;;  %v2063_v3 = vmul.f32 %v4377_v28, %v4251_v46  ;;  %v4489_v43 = vpop.eup %3045 }
 0x321   :  { %3061 = vpow2.f32 %v2174_v47  ;;  %v2166_v20 = vmul.f32 1.442695, %v2142_v22  ;;  %v2062_v59 = vmul.f32 %v4377_v28, %v4246_v9  ;;  %v2087_v41 = vmul.f32 %v4382_v44, %v2065_v40 }
 0x322   :  { %3063 = vpow2.f32 %v2172_v34  ;;  %v2086_v57 = vmul.f32 %v4382_v44, %v2064_v63  ;;  %v2061_v5 = vmul.f32 %v4377_v28, %v4239_v58  ;;  %v2085_v54 = vmul.f32 %v4382_v44, %v2063_v3 }
 0x323   :  { %3065 = vpow2.f32 %v2170_v33  ;;  %v2084_v45 = vmul.f32 %v4382_v44, %v2062_v59  ;;  %v2060_v6 = vmul.f32 %v4377_v28, %v4236_v7  ;;  %v1906_v46 = vadd.f32 1.0, %v3028_v49 }
 0x324   :  { %3067 = vpow2.f32 %v2168_v52  ;;  %v4478_v9 = vadd.f32 %v4395_v2, %v2087_v41  ;;  %v4481_v19 = vadd.f32 %v4395_v2, %v2086_v57  ;;  %v4484_v24 = vadd.f32 %v4395_v2, %v2085_v54 }
 0x325   :  { %3069 = vpow2.f32 %v2166_v20  ;;  %v4487_v58 = vadd.f32 %v4395_v2, %v2084_v45  ;;  %v2083_v4 = vmul.f32 %v4382_v44, %v2061_v5  ;;  %v2082_v23 = vmul.f32 %v4382_v44, %v2060_v6 }
 0x326   :  { %3071 = vrcp.f32 %v1908_v55  ;;  %v2141_v7 = vmin.f32 %v4478_v9, 20.0  ;;  %v2140_v38 = vmin.f32 %v4481_v19, 20.0  ;;  %v4494_v50 = vpop.eup %3047  ;;  %v2139_v42 = vmin.f32 %v4484_v24, 20.0 }
 0x327   :  { %3073 = vrcp.f32 %v1907_v60  ;;  %v2138_v49 = vmin.f32 %v4487_v58, 20.0  ;;  %v4499_v51 = vpop.eup %3049  ;;  %v2059_v1 = vmul.f32 %v4377_v28, %v4233_v61  ;;  %v2058_v17 = vmul.f32 %v4377_v28, %v4230_v35 }
 0x328   :  { %3075 = vrcp.f32 %v1906_v46  ;;  %v2164_v26 = vmul.f32 1.442695, %v2141_v7  ;;  %v2162_v29 = vmul.f32 1.442695, %v2140_v38  ;;  %v4501_v31 = vpop.eup %3051  ;;  %v2160_v11 = vmul.f32 1.442695, %v2139_v42 }
 0x329   :  { %v2158_v21 = vmul.f32 1.442695, %v2138_v49  ;;  %v4507_v47 = vpop.eup %3053  ;;  %v4510_v8 = vadd.f32 %v4395_v2, %v2083_v4  ;;  %v4513_v55 = vadd.f32 %v4395_v2, %v2082_v23  ;;  %v2081_v37 = vmul.f32 %v4382_v44, %v2059_v1 }
 0x32a   :  { %3077 = vpow2.f32 %v2164_v26  ;;  %v2080_v33 = vmul.f32 %v4382_v44, %v2058_v17  ;;  %v1905_v1 = vadd.f32 1.0, %v4425_v36  ;;  %v1903_v36 = vadd.f32 1.0, %v4440_v14 }
 0x32b   :  { %v3056_v34 = vpop.eup %3055  ;;  %3079 = vpow2.f32 %v2162_v29  ;;  %v4518_v28 = vadd.f32 %v4395_v2, %v2081_v37  ;;  %v2137_v63 = vmin.f32 %v4510_v8, 20.0  ;;  %v2136_v59 = vmin.f32 %v4513_v55, 20.0 }
 0x32c   :  { %v3058_v60 = vpop.eup %3057  ;;  %v2196_v61 = vadd.f32 1.0, %v3056_v34  ;;  %3081 = vpow2.f32 %v2160_v11  ;;  %v4522_v20 = vadd.f32 %v4395_v2, %v2080_v33  ;;  %vm2133_vm3 = vcmp.gt.f32.partialorder %v4417_v39, 20.0 }
 0x32d   :  { %v3060_v22 = vpop.eup %3059  ;;  %v2197_v35 = vadd.f32 1.0, %v3058_v60  ;;  %3083 = vpow2.f32 %v2158_v21  ;;  %v2135_v5 = vmin.f32 %v4518_v28, 20.0  ;;  %v2156_v2 = vmul.f32 1.442695, %v2137_v63 }
 0x32e   :  { %v3062_v52 = vpop.eup %3061  ;;  %3085 = vlog2.f32 %v2196_v61  ;;  %v2195_v40 = vadd.f32 1.0, %v3060_v22  ;;  %v2134_v6 = vmin.f32 %v4522_v20, 20.0  ;;  %v2154_v42 = vmul.f32 1.442695, %v2136_v59 }
 0x32f   :  { %v3064_v3 = vpop.eup %3063  ;;  %3087 = vlog2.f32 %v2197_v35  ;;  %v2194_v44 = vadd.f32 1.0, %v3062_v52  ;;  %v2152_v23 = vmul.f32 1.442695, %v2135_v5  ;;  %vm2132_vm7 = vcmp.gt.f32.partialorder %v4414_v27, 20.0 }
 0x330   :  { %v3066_v41 = vpop.eup %3065  ;;  %3089 = vlog2.f32 %v2195_v40  ;;  %v2193_v57 = vadd.f32 1.0, %v3064_v3  ;;  %v2150_v29 = vmul.f32 1.442695, %v2134_v6  ;;  %v1904_v40 = vadd.f32 1.0, %v4433_v0 }
 0x331   :  { %v3068_v54 = vpop.eup %3067  ;;  %3091 = vlog2.f32 %v2194_v44  ;;  %v2192_v45 = vadd.f32 1.0, %v3066_v41  ;;  %v1902_v41 = vadd.f32 1.0, %v4447_v15  ;;  %vm2131_vm0 = vcmp.gt.f32.partialorder %v4420_v53, 20.0 }
 0x332   :  { %v3070_v46 = vpop.eup %3069  ;;  %3093 = vlog2.f32 %v2193_v57  ;;  %v2191_v7 = vadd.f32 1.0, %v3068_v54  ;;  %vm2130_vm6 = vcmp.gt.f32.partialorder %v4423_v32, 20.0  ;;  %vm2129_vm4 = vcmp.gt.f32.partialorder %v4428_v18, 20.0 }
 0x333   :  { %v4527_v38 = vpop.eup %3071  ;;  %3095 = vlog2.f32 %v2192_v45  ;;  %v2190_v4 = vadd.f32 1.0, %v3070_v46  ;;  %vm2128_vm11 = vcmp.gt.f32.partialorder %v4431_v48, 20.0  ;;  %vm2126_vm9 = vcmp.gt.f32.partialorder %v4445_v10, 20.0 }
 0x334   :  { %v4529_v49 = vpop.eup %3073  ;;  %3097 = vlog2.f32 %v2191_v7  ;;  %vm2127_vm15 = vcmp.gt.f32.partialorder %v4438_v12, 20.0  ;;  %vm2125_vm10 = vcmp.gt.f32.partialorder %v4478_v9, 20.0  ;;  %vm2124_vm13 = vcmp.gt.f32.partialorder %v4481_v19, 20.0 }
 0x335   :  { %v4531_v26 = vpop.eup %3075  ;;  %3099 = vlog2.f32 %v2190_v4  ;;  %vm2123_vm8 = vcmp.gt.f32.partialorder %v4484_v24, 20.0  ;;  %vm2122_vm2 = vcmp.gt.f32.partialorder %v4487_v58, 20.0  ;;  %vm2121_vm12 = vcmp.gt.f32.partialorder %v4510_v8, 20.0 }
 0x336   :  { %3101 = vpow2.f32 %v2156_v2  ;;  %vm2120_vm14 = vcmp.gt.f32.partialorder %v4513_v55, 20.0  ;;  %vm2119_vm1 = vcmp.gt.f32.partialorder %v4518_v28, 20.0  ;;  %vm2118_vm5 = vcmp.gt.f32.partialorder %v4522_v20, 20.0 }
 0x337   :  { %v3078_v11 = vpop.eup %3077  ;;  %3103 = vpow2.f32 %v2154_v42 }
 0x338   :  { %v3080_v21 = vpop.eup %3079  ;;  %v2189_v17 = vadd.f32 1.0, %v3078_v11  ;;  %3105 = vpow2.f32 %v2152_v23 }
 0x339   :  { %v3082_v34 = vpop.eup %3081  ;;  %v2188_v37 = vadd.f32 1.0, %v3080_v21  ;;  %3107 = vpow2.f32 %v2150_v29 }
 0x33a   :  { %v3084_v33 = vpop.eup %3083  ;;  %3109 = vlog2.f32 %v2189_v17  ;;  %v2187_v60 = vadd.f32 1.0, %v3082_v34 }
 0x33b   :  { %v3086_v61 = vpop.eup %3085  ;;  %3111 = vlog2.f32 %v2188_v37  ;;  %v2186_v22 = vadd.f32 1.0, %v3084_v33 }
 0x33c   :  { %v3088_v35 = vpop.eup %3087  ;;  %v2227_v52 = vmul.f32 0.6931472, %v3086_v61  ;;  %3113 = vrcp.f32 %v1905_v1 }
 0x33d   :  { %v3090_v63 = vpop.eup %3089  ;;  %v2229_v3 = vmul.f32 0.6931472, %v3088_v35  ;;  %3115 = vlog2.f32 %v2187_v60 }
 0x33e   :  { %v3092_v44 = vpop.eup %3091  ;;  %v2225_v59 = vmul.f32 0.6931472, %v3090_v63  ;;  %v2244_v54 = vsel %vm2132_vm7, %v4414_v27, %v2227_v52  ;;  %3117 = vlog2.f32 %v2186_v22  ;;  %v1901_v27 = vadd.f32 1.0, %v4450_v30 }
 0x33f   :  { %v3094_v57 = vpop.eup %3093  ;;  %v2245_v5 = vsel %vm2133_vm3, %v4417_v39, %v2229_v3  ;;  %v2223_v45 = vmul.f32 0.6931472, %v3092_v44  ;;  %3119 = vrcp.f32 %v1904_v40  ;;  %v2260_v15 = vmul.f32 %v4499_v51, %v2244_v54 }
 0x340   :  { %v3096_v0 = vpop.eup %3095  ;;  %v2261_v6 = vmul.f32 %v4501_v31, %v2245_v5  ;;  %v2243_v46 = vsel %vm2131_vm0, %v4420_v53, %v2225_v59  ;;  %v2221_v7 = vmul.f32 0.6931472, %v3094_v57  ;;  %3121 = vrcp.f32 %v1903_v36 }
 0x341   :  { %v3098_v14 = vpop.eup %3097  ;;  %3123 = vrcp.f32 %v1902_v41  ;;  %v2242_v31 = vsel %vm2130_vm6, %v4423_v32, %v2223_v45  ;;  %v2219_v4 = vmul.f32 0.6931472, %v3096_v0  ;;  %v2259_v23 = vmul.f32 %v4494_v50, %v2243_v46  ;;  %v4870_v45 = vld [vmem:[#allocation7_spill] sm:$0xff] }
 0x342   :  { %v3100_v2 = vpop.eup %3099  ;;  %2962 = vmatprep.subr.mxu0 %v2261_v6  ;;  %v2241_v30 = vsel %vm2129_vm4, %v4428_v18, %v2221_v7  ;;  %v2217_v11 = vmul.f32 0.6931472, %v3098_v14  ;;  %v2258_v17 = vmul.f32 %v4507_v47, %v2242_v31  ;;  %v1900_v47 = vadd.f32 1.0, %v4453_v13 }
 0x343   :  { %v3102_v39 = vpop.eup %3101  ;;  %2963 = vmatpush3.msra.mxu0 %v2261_v6  ;;  %v2215_v42 = vmul.f32 0.6931472, %v3100_v2  ;;  %v2240_v33 = vsel %vm2128_vm11, %v4431_v48, %v2219_v4  ;;  %v1899_v52 = vadd.f32 1.0, %v4456_v16  ;;  %v2267_v0 = vadd.s32 1, %v4870_v45 }
 0x344   :  { %v3104_v53 = vpop.eup %3103  ;;  %2964 = vmatprep.subr.mxu0 %v2260_v15  ;;  %v2185_v51 = vadd.f32 1.0, %v3102_v39  ;;  %v2239_v61 = vsel %vm2127_vm15, %v4438_v12, %v2217_v11  ;;  %v2256_v48 = vmul.f32 %v4527_v38, %v2240_v33  ;;  %v1898_v12 = vadd.f32 1.0, %v4459_v62 }
 0x345   :  { %v3106_v29 = vpop.eup %3105  ;;  %2965 = vmatpush3.msra.mxu0 %v2260_v15  ;;  %v2238_v32 = vsel %vm2126_vm9, %v4445_v10, %v2215_v42  ;;  %v2184_v21 = vadd.f32 1.0, %v3104_v53  ;;  %v2257_v10 = vmul.f32 %v4489_v43, %v2241_v30  ;;  %v2255_v13 = vmul.f32 %v4529_v49, %v2239_v61 }
 0x346   :  { %v3108_v1 = vpop.eup %3107  ;;  %2966 = vmatprep.subr.mxu0 %v2259_v23  ;;  %v2254_v34 = vmul.f32 %v4531_v26, %v2238_v32  ;;  %3125 = vlog2.f32 %v2185_v51  ;;  %v2183_v50 = vadd.f32 1.0, %v3106_v29  ;;  %v2263_v31 = vmul.u32 8, %v4870_v45 }
 0x347   :  { %v3110_v37 = vpop.eup %3109  ;;  %2967 = vmatpush3.msra.mxu0 %v2259_v23  ;;  %3127 = vlog2.f32 %v2184_v21  ;;  %v2182_v18 = vadd.f32 1.0, %v3108_v1  ;;  %v2269_v4 = vmul.u32 8, %v2267_v0  ;;  %vm4871_vm6 = vcmask 261120  }
 0x348   :  { %v3112_v60 = vpop.eup %3111  ;;  %2968 = vmatprep.subr.mxu0 %v2258_v17  ;;  %3129 = vlog2.f32 %v2183_v50  ;;  %v2213_v22 = vmul.f32 0.6931472, %v3110_v37  ;;  %vm2265_vm3 = vcmp.ge.s32.totalorder %v4861_v25, %v2263_v31  ;;  %vm4872_vm4 = vmmov %vm4871_vm6 }
 0x349   :  { %v3114_v26 = vpop.eup %3113  ;;  %2969 = vmatpush3.msra.mxu0 %v2258_v17  ;;  %3131 = vlog2.f32 %v2182_v18  ;;  %v2211_v43 = vmul.f32 0.6931472, %v3112_v60  ;;  %vm2271_vm7 = vcmp.lt.s32.totalorder %v4861_v25, %v2269_v4  ;;  %vm4873_vm11 = vmmov %vm4872_vm4 }
 0x34a   :  { %v3116_v35 = vpop.eup %3115  ;;  %2970 = vmatprep.subr.mxu0 %v2257_v10  ;;  %3133 = vrcp.f32 %v1901_v27  ;;  %v2237_v3 = vsel %vm2125_vm10, %v4478_v9, %v2213_v22  ;;  %vm2273_vm0 = vmand %vm2265_vm3, %vm2271_vm7 }
 0x34b   :  { %2971 = vmatpush3.msra.mxu0 %v2257_v10  ;;  %v3118_v40 = vpop.eup %3117  ;;  %3135 = vrcp.f32 %v1900_v47  ;;  %v2209_v36 = vmul.f32 0.6931472, %v3116_v35  ;;  %v2236_v44 = vsel %vm2124_vm13, %v4481_v19, %v2211_v43  ;;  %v2253_v59 = vmul.f32 %v3114_v26, %v2237_v3  ;;  %vm4874_vm9 = vmmov %vm4872_vm4  ;;  %v2598_v3 = vld [vmem:[%s4624_s15] ss:$0 sm:$0xff]  ;;  %s3178_s15 = smov [#allocation2]  }
 0x34c   :  { %2972 = vmatprep.subr.mxu0 %v2256_v48  ;;  %v3120_v63 = vpop.eup %3119  ;;  %3137 = vrcp.f32 %v1899_v52  ;;  %v2207_v49 = vmul.f32 0.6931472, %v3118_v40  ;;  %vm4875_vm13 = vmmov %vm4872_vm4 }
 0x34d   :  { %2973 = vmatpush3.msra.mxu0 %v2256_v48  ;;  %v3122_v38 = vpop.eup %3121  ;;  %3139 = vrcp.f32 %v1898_v12  ;;  %v2235_v62 = vsel %vm2123_vm8, %v4484_v24, %v2209_v36  ;;  %v2252_v9 = vmul.f32 %v3120_v63, %v2236_v44  ;;  %vm4876_vm8 = vmmov %vm4872_vm4 }
 0x34e   :  { %2974 = vmatprep.subr.mxu0 %v2255_v13  ;;  %v3124_v16 = vpop.eup %3123  ;;  %v2234_v57 = vsel %vm2122_vm2, %v4487_v58, %v2207_v49  ;;  %v2251_v19 = vmul.f32 %v3122_v38, %v2235_v62 }
 0x34f   :  { %2975 = vmatpush3.msra.mxu0 %v2255_v13  ;;  %v2250_v46 = vmul.f32 %v3124_v16, %v2234_v57  ;;  %v2599_v16 = vld [vmem:[%s4625_s16] ss:$0 sm:$0xff]  ;;  %v3152_v57 = vld [vmem:[%s4651_s27 + $0x8] sm:$0xff]  ;;  %s2425_s16 = sshll.u32 %s3178_s15, 4  ;;  %s2426_s16 = int_to_ptr.vmem [resolvable:$true] %s2425_s16 }
 0x350   :  { %2976 = vmatprep.subr.mxu0 %v2254_v34  ;;  %p3158_p1 = scmp.lt.s32.totalorder %s2426_s16, %s2426_s16 }
 0x351   :  { %2977 = vmatpush3.msra.mxu0 %v2254_v34 }
 0x352   :  { %2978 = vmatprep.subr.mxu0 %v2253_v59 }
 0x353   :  { %v3126_v41 = vpop.eup %3125  ;;  %2979 = vmatpush3.msra.mxu0 %v2253_v59 }
 0x354   :  { %v3128_v5 = vpop.eup %3127  ;;  %2980 = vmatprep.subr.mxu0 %v2252_v9  ;;  %v2205_v54 = vmul.f32 0.6931472, %v3126_v41 }
 0x355   :  { %v3130_v6 = vpop.eup %3129  ;;  %2981 = vmatpush3.msra.mxu0 %v2252_v9  ;;  %v2203_v14 = vmul.f32 0.6931472, %v3128_v5  ;;  %v3151_v9 = vld [vmem:[%s4651_s27] sm:$0xff]  ;;  %s3153_s27 = scalar_lea.vmem %s2426_s16, 256 }
 0x356   :  { %v3132_v24 = vpop.eup %3131  ;;  %2982 = vmatprep.subr.mxu0 %v2251_v19  ;;  %v2233_v7 = vsel %vm2121_vm12, %v4510_v8, %v2205_v54  ;;  %v2201_v2 = vmul.f32 0.6931472, %v3130_v6  ;;  %p3154_p0 = scmp.ne.s32.totalorder %s2426_s16, %s3153_s27  ;;  %p3159_p2 = scmp.lt.s32.totalorder %s3153_s27, %s3153_s27 }
 0x357   :  { %v3134_v58 = vpop.eup %3133  ;;  %2983 = vmatpush3.msra.mxu0 %v2251_v19  ;;  %v2232_v15 = vsel %vm2120_vm14, %v4513_v55, %v2203_v14  ;;  %v2199_v27 = vmul.f32 0.6931472, %v3132_v24 }
 0x358   :  { %2984 = vmatprep.subr.mxu0 %v2250_v46  ;;  %v2249_v39 = vmul.f32 %v3134_v58, %v2233_v7  ;;  %v3136_v42 = vpop.eup %3135  ;;  %v2231_v53 = vsel %vm2119_vm1, %v4518_v28, %v2201_v2  ;;  %p3160_p3 = por %p3159_p2, %p3158_p1 }
 0x359   :  { %2985 = vmatpush3.msra.mxu0 %v2250_v46  ;;  %v2248_v8 = vmul.f32 %v3136_v42, %v2232_v15  ;;  %v3138_v23 = vpop.eup %3137  ;;  %v2230_v55 = vsel %vm2118_vm5, %v4522_v20, %v2199_v27 }
 0x35a   :  { %2986 = vmatprep.subr.mxu0 %v2249_v39  ;;  %v2247_v51 = vmul.f32 %v3138_v23, %v2231_v53  ;;  %v3140_v29 = vpop.eup %3139  ;;  %p3161_p4 = pnand %p3160_p3, %p3154_p0 }
 0x35b   :  { %2987 = vmatpush3.msra.mxu0 %v2249_v39  ;;  %v2246_v30 = vmul.f32 %v3140_v29, %v2230_v55 }
 0x35c   :  { %2988 = vmatprep.subr.mxu0 %v2248_v8 }
 0x35d   :  { %2989 = vmatpush3.msra.mxu0 %v2248_v8 }
 0x35e   :  { %2990 = vmatprep.subr.mxu0 %v2247_v51 }
 0x35f   :  { %2991 = vmatpush3.msra.mxu0 %v2247_v51 }
 0x360   :  { %2992 = vmatprep.subr.mxu0 %v2246_v30 }
 0x361   :  { %2993 = vmatpush3.msra.mxu0 %v2246_v30 }
 0x362   :  { %2995 = vmatmul.mubr.msk.f32.vlgmr.msra.gmra.mxu0 %vm2273_vm0, %v3177_v56 }
 0x422   :  { %v2996_v28 = vpop.f32.mrf.mxu0 }
 0x423   :  { %v2356_v20 = vsel %vm4871_vm6, %v2996_v28, 0.0 }
 0x424   :  { %v2344_v11 = vpop.f32.mrf.mxu0 }
 0x425   :  { %v2355_v32 = vsel %vm4872_vm4, %v2344_v11, 0.0 }
 0x426   :  { %v2357_v21 = vadd.f32 %v2356_v20, %v2355_v32 }
 0x428   :  { %v2358_v1 = vrot.slane %v2357_v21, 4 }
 0x42a   :  { %v2359_v17 = vadd.f32 %v2358_v1, %v2357_v21 }
 0x42c   :  { %v2360_v25 = vrot.slane %v2359_v17, 2 }
 0x42e   :  { %v2361_v34 = vadd.f32 %v2360_v25, %v2359_v17 }
 0x430   :  { %v2362_v50 = vrot.slane %v2361_v34, 1 }
 0x432   :  { %v2363_v37 = vadd.f32 %v2362_v50, %v2361_v34 }
 0x434   :  { %v2365_v33 = vmul.f32 0.0625, %v2363_v37 }
 0x436   :  { %v2366_v18 = vsub.f32 %v2344_v11, %v2365_v33  ;;  %v2367_v60 = vsub.f32 %v2996_v28, %v2365_v33 }
 0x438   :  { %v2368_v10 = vmul.f32 %v2366_v18, %v2366_v18  ;;  %v2369_v47 = vmul.f32 %v2367_v60, %v2367_v60 }
 0x43a   :  { %v2370_v56 = vsel %vm4873_vm11, %v2368_v10, 0.0  ;;  %v2371_v26 = vsel %vm4874_vm9, %v2369_v47, 0.0 }
 0x43b   :  { %v2372_v61 = vadd.f32 %v2371_v26, %v2370_v56 }
 0x43d   :  { %v2373_v22 = vrot.slane %v2372_v61, 4 }
 0x43f   :  { %v2374_v35 = vadd.f32 %v2373_v22, %v2372_v61 }
 0x441   :  { %v2375_v48 = vrot.slane %v2374_v35, 2 }
 0x443   :  { %v2376_v52 = vadd.f32 %v2375_v48, %v2374_v35 }
 0x445   :  { %v2377_v43 = vrot.slane %v2376_v52, 1 }
 0x447   :  { %v2378_v40 = vadd.f32 %v2377_v43, %v2376_v52 }
 0x449   :  { %v2379_v13 = vmul.f32 0.0625, %v2378_v40 }
 0x44b   :  { %v2380_v12 = vadd.f32 1e-05, %v2379_v13 }
 0x44d   :  { %3141 = vrsqrt.f32 %v2380_v12 }
 0x45a   :  { %v3142_v63 = vpop.eup %3141 }
 0x45b   :  { %v2382_v36 = vmul.f32 %v3142_v63, %v2366_v18  ;;  %v2383_v38 = vmul.f32 %v3142_v63, %v2367_v60 }
 0x45d   :  { %v2390_v44 = vmul.f32 %v2598_v3, %v2382_v36  ;;  %v2391_v49 = vmul.f32 %v2598_v3, %v2383_v38 }
 0x45f   :  { %v2398_v59 = vadd.f32 %v2599_v16, %v2390_v44  ;;  %v2399_v62 = vadd.f32 %v2599_v16, %v2391_v49 }
 0x461   :  { %v2400_v41 = vadd.f32 %v3151_v9, %v2398_v59  ;;  %v2401_v5 = vadd.f32 %v3152_v57, %v2399_v62 }
 0x463   :  { %v2404_v19 = vmin.f32 %v2400_v41, 20.0  ;;  %v2405_v54 = vmin.f32 %v2401_v5, 20.0  ;;  %vm2402_vm15 = vcmp.gt.f32.partialorder %v2400_v41, 20.0  ;;  %vm2403_vm10 = vcmp.gt.f32.partialorder %v2401_v5, 20.0 }
 0x465   :  { %v2406_v45 = vmul.f32 1.442695, %v2404_v19  ;;  %v2408_v0 = vmul.f32 1.442695, %v2405_v54 }
 0x467   :  { %3143 = vpow2.f32 %v2406_v45 }
 0x468   :  { %3145 = vpow2.f32 %v2408_v0 }
 0x474   :  { %v3144_v6 = vpop.eup %3143 }
 0x475   :  { %v3146_v14 = vpop.eup %3145  ;;  %v2410_v24 = vadd.f32 1.0, %v3144_v6 }
 0x476   :  { %v2411_v46 = vadd.f32 1.0, %v3146_v14 }
 0x477   :  { %3147 = vlog2.f32 %v2410_v24 }
 0x478   :  { %3149 = vlog2.f32 %v2411_v46 }
 0x484   :  { %v3148_v7 = vpop.eup %3147 }
 0x485   :  { %v3150_v2 = vpop.eup %3149  ;;  %v2413_v58 = vmul.f32 0.6931472, %v3148_v7 }
 0x486   :  { %v2415_v15 = vmul.f32 0.6931472, %v3150_v2 }
 0x487   :  { %v2416_v27 = vsel %vm2402_vm15, %v2400_v41, %v2413_v58 }
 0x488   :  { %v2417_v39 = vsel %vm2403_vm10, %v2401_v5, %v2415_v15  ;;  %2418 = vst.msk [vmem:[#allocation2] sm:$0xff] %vm4875_vm13, %v2416_v27 }
 0x489   :  { %2419 = vst.msk [vmem:[#allocation2 + $0x8] sm:$0xff] %vm4876_vm8, %v2417_v39 }
 0x48a   :  { %3164 = shalt.err (!%p3161_p4)
}
 0x48b   :  { %s3179_s23 = smov 128   ;;  %s3180_s24 = smov 8  }
 0x48c   :  { %2431 = dma.vmem_to_hbm [thread:$0]  %s2426_s16, 256, %s4626_s17, [#allocation3], %s3179_s23, %s3179_s23, %s3180_s24  }
 0x48d   :  { %3173 = dma.done.wait [#allocation3], 256  }
 0x48e   :  { %3174 = vsyncadd [#allocation3], 4294967040 }
 0x48f   :  { %2435 = vsyncpa [#allocation3], 1 }

</bundles_post_ra>
